<compile_context>
chip_gen: v7x
topology: tpu7x:2x2x1
jax: 0.10.0
libtpu: 0.0.40
codegen_flags: <defaults>
</compile_context>

<pallas_src>
import jax
import jax.numpy as jnp
from jax.experimental import pallas as pl
from jax.experimental.pallas import tpu as pltpu

HIDDEN = 32   # config.hidden_size default
LAYERS = 2    # config.hidden_layers default


def _lstm_gates(gates, c, H):
    """PyTorch LSTM cell epilogue from pre-activation gates (B, 4H) and cell state c (B, H).

    Full-vreg sigmoid/tanh (2 EUP pushes instead of 4); per-gate lane slices go to the
    XLU slot and overlap the EUP work.
    TODO(synk): at large padded batch, switch to per-gate-slice activations to halve
    EUP lane-work (EUP becomes the binding slot there, esp. v5e).
    """
    sig = jax.nn.sigmoid(gates)          # one EUP pass over the whole (B, 4H) tile
    th = jnp.tanh(gates)                 # one EUP pass over the whole (B, 4H) tile
    i = sig[:, 0 * H:1 * H]
    f = sig[:, 1 * H:2 * H]
    g = th[:, 2 * H:3 * H]
    o = sig[:, 3 * H:4 * H]
    c_new = f * c + i * g
    h_new = o * jnp.tanh(c_new)
    return h_new, c_new


def _make_lstm_kernel(T, BB, I, H, O):
    def kernel(x_ref, wih0_ref, wrec_ref, b01_ref, wout_ref, bout_ref, out_ref):
        # x_ref:    (T, BB, I) time-major block of the (padded) batch
        # wih0_ref: (I, 4H)   layer-0 input weight (pre-transposed)
        # wrec_ref: (3, H, 4H) stacked [W_hh0^T, W_ih1^T, W_hh1^T]
        # b01_ref:  (2, 4H)   folded [b_ih0+b_hh0, b_ih1+b_hh1]
        whh0 = wrec_ref[0]                                     # (H, 4H)
        wih1 = wrec_ref[1]                                     # (H, 4H)
        whh1 = wrec_ref[2]                                     # (H, 4H)
        b01 = b01_ref[...]                                     # (2, 4H)
        b1 = jnp.broadcast_to(b01[1:2, :], (BB, 4 * H))        # hoisted broadcast
        wout = wout_ref[...]                                   # (H, O)
        bout = bout_ref[...]                                   # (1, O)

        # Hoisted layer-0 input projection (batch-parallel, off the serial chain),
        # folded layer-0 bias, reshaped to (T, BB, 4H) for aligned per-step indexing.
        xf = x_ref[...].reshape(T * BB, I)
        gx = (jnp.dot(xf, wih0_ref[...], preferred_element_type=jnp.float32)
              + b01[0:1, :]).reshape(T, BB, 4 * H)

        zeros = jnp.zeros((BB, H), jnp.float32)
        h0, c0, h1, c1 = zeros, zeros, zeros, zeros

        # T is static (config caps at 50; =8 here) -> fully unrolled recurrence.
        for t in range(T):
            # Layer 0: only the recurrent matmul remains per step.
            gates0 = jnp.dot(h0, whh0, preferred_element_type=jnp.float32) + gx[t]
            h0, c0 = _lstm_gates(gates0, c0, H)
            # Layer 1: split projection. rec1 depends only on the previous step's h1,
            # so it can issue while layer 0 is still in flight (no concat, no fused dot).
            rec1 = jnp.dot(h1, whh1, preferred_element_type=jnp.float32)
            gates1 = (jnp.dot(h0, wih1, preferred_element_type=jnp.float32)
                      + rec1 + b1)
            h1, c1 = _lstm_gates(gates1, c1, H)

        # output_layer(rnn_output[:, -1, :])
        out_ref[...] = jnp.dot(h1, wout, preferred_element_type=jnp.float32) + bout
    return kernel


def rnn_forward(x, params):
    """x: (B, T, I) float32 (batch_first), params: PyTorch-shaped LSTM + Linear weights."""
    B, T, I = x.shape
    H = HIDDEN
    O = params['w_out'].shape[0]

    # Pad batch to the f32 sublane count (8); for large batches, block into 128-row
    # chunks per grid step so both TensorCores (v7x) get work and MXU rows fill up.
    B_pad = max(8, ((B + 7) // 8) * 8)
    if B_pad > 128:
        BB = 128
        B_pad = ((B_pad + BB - 1) // BB) * BB
    else:
        BB = B_pad
    n_blocks = B_pad // BB

    x_p = jnp.zeros((B_pad, T, I), jnp.float32).at[:B].set(x)
    x_tm = jnp.transpose(x_p, (1, 0, 2))                        # (T, B_pad, I) time-major

    wih0 = params['w_ih0'].T                                    # (I, 4H)
    wrec = jnp.stack([params['w_hh0'].T,                        # (3, H, 4H)
                      params['w_ih1'].T,
                      params['w_hh1'].T], axis=0)
    b01 = jnp.stack([params['b_ih0'] + params['b_hh0'],         # (2, 4H) folded biases
                     params['b_ih1'] + params['b_hh1']], axis=0)
    wout = params['w_out'].T                                    # (H, O)
    bout = params['b_out'].reshape(1, O)

    def full(shape):
        return pl.BlockSpec(shape, lambda b: (0,) * len(shape))

    out = pl.pallas_call(
        _make_lstm_kernel(T, BB, I, H, O),
        out_shape=jax.ShapeDtypeStruct((B_pad, O), jnp.float32),
        grid=(n_blocks,),
        in_specs=[
            pl.BlockSpec((T, BB, I), lambda b: (0, b, 0)),      # batch-blocked input
            full((I, 4 * H)),
            full((3, H, 4 * H)),
            full((2, 4 * H)),
            full((H, O)),
            full((1, O)),
        ],
        out_specs=pl.BlockSpec((BB, O), lambda b: (b, 0)),
        compiler_params=pltpu.CompilerParams(
            dimension_semantics=("parallel",)),
    )(x_tm, wih0, wrec, b01, wout, bout)
    return out[:B]


def rnn_reference(x, params):
    """Pure-JAX reference mirroring torch.nn.LSTM(batch_first=True) + Linear."""
    B, T, _ = x.shape
    H = HIDDEN
    h = [jnp.zeros((B, H), jnp.float32) for _ in range(LAYERS)]
    c = [jnp.zeros((B, H), jnp.float32) for _ in range(LAYERS)]
    layer_w = [
        (params['w_ih0'], params['w_hh0'], params['b_ih0'], params['b_hh0']),
        (params['w_ih1'], params['w_hh1'], params['b_ih1'], params['b_hh1']),
    ]
    for t in range(T):
        inp = x[:, t, :]
        for l in range(LAYERS):
            w_ih, w_hh, b_ih, b_hh = layer_w[l]
            gates = inp @ w_ih.T + b_ih + h[l] @ w_hh.T + b_hh
            i = jax.nn.sigmoid(gates[:, 0 * H:1 * H])
            f = jax.nn.sigmoid(gates[:, 1 * H:2 * H])
            g = jnp.tanh(gates[:, 2 * H:3 * H])
            o = jax.nn.sigmoid(gates[:, 3 * H:4 * H])
            c[l] = f * c[l] + i * g
            h[l] = o * jnp.tanh(c[l])
            inp = h[l]
    return h[-1] @ params['w_out'].T + params['b_out']


if __name__ == "__main__":
    key = jax.random.PRNGKey(0)
    B, T, I, O = 2, 8, 4, 3
    H = HIDDEN
    bound = 1.0 / jnp.sqrt(jnp.float32(H))
    keys = jax.random.split(key, 12)

    def u(kk, shape):
        return jax.random.uniform(kk, shape, jnp.float32, -bound, bound)

    # Deterministic synthetic parameters (PyTorch nn.LSTM / nn.Linear shapes).
    params = {
        'w_ih0': u(keys[0], (4 * H, I)), 'w_hh0': u(keys[1], (4 * H, H)),
        'b_ih0': u(keys[2], (4 * H,)),   'b_hh0': u(keys[3], (4 * H,)),
        'w_ih1': u(keys[4], (4 * H, H)), 'w_hh1': u(keys[5], (4 * H, H)),
        'b_ih1': u(keys[6], (4 * H,)),   'b_hh1': u(keys[7], (4 * H,)),
        'w_out': u(keys[8], (O, H)),     'b_out': u(keys[9], (O,)),
    }
    x = jax.random.normal(keys[10], (B, T, I), jnp.float32)

    out = jax.block_until_ready(rnn_forward(x, params))
    ref = rnn_reference(x, params)

    assert out.shape == (B, O)
    # DEFAULT (single-pass bf16-input) MXU precision in both kernel and reference;
    # observed divergence is O(1e-4) through the 8-step, 2-layer recurrence.
    if not jnp.allclose(out, ref, atol=2e-3, rtol=2e-3):
        raise AssertionError("Pallas LSTM output mismatch vs reference")
    print("KERNEL_OK")
</pallas_src>

<mosaic_0001>
module attributes {stable_mosaic.version = 11 : i64} {
  func.func @kernel(%arg0: i32, %arg1: memref<8x8x4xf32, #tpu.memory_space<vmem>>, %arg2: memref<4x128xf32, #tpu.memory_space<vmem>>, %arg3: memref<3x32x128xf32, #tpu.memory_space<vmem>>, %arg4: memref<2x128xf32, #tpu.memory_space<vmem>>, %arg5: memref<32x3xf32, #tpu.memory_space<vmem>>, %arg6: memref<1x3xf32, #tpu.memory_space<vmem>>, %arg7: memref<8x3xf32, #tpu.memory_space<vmem>>) attributes {dimension_semantics = [#tpu.dimension_semantics<parallel>], iteration_bounds = array<i64: 1>, scalar_prefetch = 0 : i64, scratch_operands = 0 : i64, tpu.core_type = #tpu.core_type<tc>, window_params = [{transform_indices = @transform_0, window_bounds = array<i64: 8, 8, 4>}, {pipeline_mode = #tpu.pipeline_mode<synchronous>, transform_indices = @transform_1, window_bounds = array<i64: 4, 128>}, {pipeline_mode = #tpu.pipeline_mode<synchronous>, transform_indices = @transform_2, window_bounds = array<i64: 3, 32, 128>}, {pipeline_mode = #tpu.pipeline_mode<synchronous>, transform_indices = @transform_3, window_bounds = array<i64: 2, 128>}, {pipeline_mode = #tpu.pipeline_mode<synchronous>, transform_indices = @transform_4, window_bounds = array<i64: 32, 3>}, {pipeline_mode = #tpu.pipeline_mode<synchronous>, transform_indices = @transform_5, window_bounds = array<i64: 1, 3>}, {transform_indices = @transform_6, window_bounds = array<i64: 8, 3>}]} {
    %c0 = arith.constant 0 : index
    %c0_0 = arith.constant 0 : index
    %c0_1 = arith.constant 0 : index
    %0 = vector.load %arg3[%c0, %c0_0, %c0_1] : memref<3x32x128xf32, #tpu.memory_space<vmem>>, vector<1x32x128xf32>
    %1 = vector.shape_cast %0 : vector<1x32x128xf32> to vector<32x128xf32>
    %c1 = arith.constant 1 : index
    %c0_2 = arith.constant 0 : index
    %c0_3 = arith.constant 0 : index
    %2 = vector.load %arg3[%c1, %c0_2, %c0_3] : memref<3x32x128xf32, #tpu.memory_space<vmem>>, vector<1x32x128xf32>
    %3 = vector.shape_cast %2 : vector<1x32x128xf32> to vector<32x128xf32>
    %c2 = arith.constant 2 : index
    %c0_4 = arith.constant 0 : index
    %c0_5 = arith.constant 0 : index
    %4 = vector.load %arg3[%c2, %c0_4, %c0_5] : memref<3x32x128xf32, #tpu.memory_space<vmem>>, vector<1x32x128xf32>
    %5 = vector.shape_cast %4 : vector<1x32x128xf32> to vector<32x128xf32>
    %c0_6 = arith.constant 0 : index
    %c0_7 = arith.constant 0 : index
    %6 = vector.load %arg4[%c0_6, %c0_7] : memref<2x128xf32, #tpu.memory_space<vmem>>, vector<2x128xf32>
    %7 = vector.extract_strided_slice %6 {offsets = [1, 0], sizes = [1, 128], strides = [1, 1]} : vector<2x128xf32> to vector<1x128xf32>
    %8 = vector.shape_cast %7 : vector<1x128xf32> to vector<1x128xf32>
    %9 = vector.broadcast %8 : vector<1x128xf32> to vector<8x128xf32>
    %c0_8 = arith.constant 0 : index
    %c0_9 = arith.constant 0 : index
    %10 = vector.load %arg5[%c0_8, %c0_9] : memref<32x3xf32, #tpu.memory_space<vmem>>, vector<32x3xf32>
    %c0_10 = arith.constant 0 : index
    %c0_11 = arith.constant 0 : index
    %11 = vector.load %arg6[%c0_10, %c0_11] : memref<1x3xf32, #tpu.memory_space<vmem>>, vector<1x3xf32>
    %c0_12 = arith.constant 0 : index
    %c0_13 = arith.constant 0 : index
    %c0_14 = arith.constant 0 : index
    %12 = vector.load %arg1[%c0_12, %c0_13, %c0_14] : memref<8x8x4xf32, #tpu.memory_space<vmem>>, vector<8x8x4xf32>
    %13 = vector.shape_cast %12 : vector<8x8x4xf32> to vector<64x4xf32>
    %c0_15 = arith.constant 0 : index
    %c0_16 = arith.constant 0 : index
    %14 = vector.load %arg2[%c0_15, %c0_16] : memref<4x128xf32, #tpu.memory_space<vmem>>, vector<4x128xf32>
    %cst = arith.constant dense<0.000000e+00> : vector<64x128xf32>
    %15 = tpu.matmul %13, %14, %cst {dimension_numbers = #tpu.dot_dimension_numbers<[1], [0], [0], [1], [0, 0, 1, 1], [], []>} : vector<64x4xf32>, vector<4x128xf32>, vector<64x128xf32> -> vector<64x128xf32>
    %16 = vector.extract_strided_slice %6 {offsets = [0, 0], sizes = [1, 128], strides = [1, 1]} : vector<2x128xf32> to vector<1x128xf32>
    %17 = vector.broadcast %16 : vector<1x128xf32> to vector<64x128xf32>
    %18 = arith.addf %15, %17 : vector<64x128xf32>
    %19 = vector.shape_cast %18 : vector<64x128xf32> to vector<8x8x128xf32>
    %cst_17 = arith.constant 0.000000e+00 : f32
    %20 = vector.broadcast %cst_17 : f32 to vector<8x32xf32>
    %cst_18 = arith.constant dense<0.000000e+00> : vector<8x128xf32>
    %21 = tpu.matmul %20, %1, %cst_18 {dimension_numbers = #tpu.dot_dimension_numbers<[1], [0], [0], [1], [0, 0, 1, 1], [], []>} : vector<8x32xf32>, vector<32x128xf32>, vector<8x128xf32> -> vector<8x128xf32>
    %22 = vector.extract_strided_slice %19 {offsets = [0, 0, 0], sizes = [1, 8, 128], strides = [1, 1, 1]} : vector<8x8x128xf32> to vector<1x8x128xf32>
    %23 = vector.shape_cast %22 : vector<1x8x128xf32> to vector<8x128xf32>
    %24 = arith.addf %21, %23 : vector<8x128xf32>
    %25 = arith.negf %24 : vector<8x128xf32>
    %26 = math.exp %25 : vector<8x128xf32>
    %cst_19 = arith.constant 1.000000e+00 : f32
    %27 = vector.broadcast %cst_19 : f32 to vector<8x128xf32>
    %28 = arith.addf %27, %26 : vector<8x128xf32>
    %29 = arith.divf %27, %28 : vector<8x128xf32>
    %30 = math.tanh %24 : vector<8x128xf32>
    %31 = vector.extract_strided_slice %29 {offsets = [0, 0], sizes = [8, 32], strides = [1, 1]} : vector<8x128xf32> to vector<8x32xf32>
    %32 = vector.extract_strided_slice %29 {offsets = [0, 32], sizes = [8, 32], strides = [1, 1]} : vector<8x128xf32> to vector<8x32xf32>
    %33 = vector.extract_strided_slice %30 {offsets = [0, 64], sizes = [8, 32], strides = [1, 1]} : vector<8x128xf32> to vector<8x32xf32>
    %34 = vector.extract_strided_slice %29 {offsets = [0, 96], sizes = [8, 32], strides = [1, 1]} : vector<8x128xf32> to vector<8x32xf32>
    %35 = arith.mulf %32, %20 : vector<8x32xf32>
    %36 = arith.mulf %31, %33 : vector<8x32xf32>
    %37 = arith.addf %35, %36 : vector<8x32xf32>
    %38 = math.tanh %37 : vector<8x32xf32>
    %39 = arith.mulf %34, %38 : vector<8x32xf32>
    %cst_20 = arith.constant dense<0.000000e+00> : vector<8x128xf32>
    %40 = tpu.matmul %20, %5, %cst_20 {dimension_numbers = #tpu.dot_dimension_numbers<[1], [0], [0], [1], [0, 0, 1, 1], [], []>} : vector<8x32xf32>, vector<32x128xf32>, vector<8x128xf32> -> vector<8x128xf32>
    %cst_21 = arith.constant dense<0.000000e+00> : vector<8x128xf32>
    %41 = tpu.matmul %39, %3, %cst_21 {dimension_numbers = #tpu.dot_dimension_numbers<[1], [0], [0], [1], [0, 0, 1, 1], [], []>} : vector<8x32xf32>, vector<32x128xf32>, vector<8x128xf32> -> vector<8x128xf32>
    %42 = arith.addf %41, %40 : vector<8x128xf32>
    %43 = arith.addf %42, %9 : vector<8x128xf32>
    %44 = arith.negf %43 : vector<8x128xf32>
    %45 = math.exp %44 : vector<8x128xf32>
    %cst_22 = arith.constant 1.000000e+00 : f32
    %46 = vector.broadcast %cst_22 : f32 to vector<8x128xf32>
    %47 = arith.addf %46, %45 : vector<8x128xf32>
    %48 = arith.divf %46, %47 : vector<8x128xf32>
    %49 = math.tanh %43 : vector<8x128xf32>
    %50 = vector.extract_strided_slice %48 {offsets = [0, 0], sizes = [8, 32], strides = [1, 1]} : vector<8x128xf32> to vector<8x32xf32>
    %51 = vector.extract_strided_slice %48 {offsets = [0, 32], sizes = [8, 32], strides = [1, 1]} : vector<8x128xf32> to vector<8x32xf32>
    %52 = vector.extract_strided_slice %49 {offsets = [0, 64], sizes = [8, 32], strides = [1, 1]} : vector<8x128xf32> to vector<8x32xf32>
    %53 = vector.extract_strided_slice %48 {offsets = [0, 96], sizes = [8, 32], strides = [1, 1]} : vector<8x128xf32> to vector<8x32xf32>
    %54 = arith.mulf %51, %20 : vector<8x32xf32>
    %55 = arith.mulf %50, %52 : vector<8x32xf32>
    %56 = arith.addf %54, %55 : vector<8x32xf32>
    %57 = math.tanh %56 : vector<8x32xf32>
    %58 = arith.mulf %53, %57 : vector<8x32xf32>
    %cst_23 = arith.constant dense<0.000000e+00> : vector<8x128xf32>
    %59 = tpu.matmul %39, %1, %cst_23 {dimension_numbers = #tpu.dot_dimension_numbers<[1], [0], [0], [1], [0, 0, 1, 1], [], []>} : vector<8x32xf32>, vector<32x128xf32>, vector<8x128xf32> -> vector<8x128xf32>
    %60 = vector.extract_strided_slice %19 {offsets = [1, 0, 0], sizes = [1, 8, 128], strides = [1, 1, 1]} : vector<8x8x128xf32> to vector<1x8x128xf32>
    %61 = vector.shape_cast %60 : vector<1x8x128xf32> to vector<8x128xf32>
    %62 = arith.addf %59, %61 : vector<8x128xf32>
    %63 = arith.negf %62 : vector<8x128xf32>
    %64 = math.exp %63 : vector<8x128xf32>
    %cst_24 = arith.constant 1.000000e+00 : f32
    %65 = vector.broadcast %cst_24 : f32 to vector<8x128xf32>
    %66 = arith.addf %65, %64 : vector<8x128xf32>
    %67 = arith.divf %65, %66 : vector<8x128xf32>
    %68 = math.tanh %62 : vector<8x128xf32>
    %69 = vector.extract_strided_slice %67 {offsets = [0, 0], sizes = [8, 32], strides = [1, 1]} : vector<8x128xf32> to vector<8x32xf32>
    %70 = vector.extract_strided_slice %67 {offsets = [0, 32], sizes = [8, 32], strides = [1, 1]} : vector<8x128xf32> to vector<8x32xf32>
    %71 = vector.extract_strided_slice %68 {offsets = [0, 64], sizes = [8, 32], strides = [1, 1]} : vector<8x128xf32> to vector<8x32xf32>
    %72 = vector.extract_strided_slice %67 {offsets = [0, 96], sizes = [8, 32], strides = [1, 1]} : vector<8x128xf32> to vector<8x32xf32>
    %73 = arith.mulf %70, %37 : vector<8x32xf32>
    %74 = arith.mulf %69, %71 : vector<8x32xf32>
    %75 = arith.addf %73, %74 : vector<8x32xf32>
    %76 = math.tanh %75 : vector<8x32xf32>
    %77 = arith.mulf %72, %76 : vector<8x32xf32>
    %cst_25 = arith.constant dense<0.000000e+00> : vector<8x128xf32>
    %78 = tpu.matmul %58, %5, %cst_25 {dimension_numbers = #tpu.dot_dimension_numbers<[1], [0], [0], [1], [0, 0, 1, 1], [], []>} : vector<8x32xf32>, vector<32x128xf32>, vector<8x128xf32> -> vector<8x128xf32>
    %cst_26 = arith.constant dense<0.000000e+00> : vector<8x128xf32>
    %79 = tpu.matmul %77, %3, %cst_26 {dimension_numbers = #tpu.dot_dimension_numbers<[1], [0], [0], [1], [0, 0, 1, 1], [], []>} : vector<8x32xf32>, vector<32x128xf32>, vector<8x128xf32> -> vector<8x128xf32>
    %80 = arith.addf %79, %78 : vector<8x128xf32>
    %81 = arith.addf %80, %9 : vector<8x128xf32>
    %82 = arith.negf %81 : vector<8x128xf32>
    %83 = math.exp %82 : vector<8x128xf32>
    %cst_27 = arith.constant 1.000000e+00 : f32
    %84 = vector.broadcast %cst_27 : f32 to vector<8x128xf32>
    %85 = arith.addf %84, %83 : vector<8x128xf32>
    %86 = arith.divf %84, %85 : vector<8x128xf32>
    %87 = math.tanh %81 : vector<8x128xf32>
    %88 = vector.extract_strided_slice %86 {offsets = [0, 0], sizes = [8, 32], strides = [1, 1]} : vector<8x128xf32> to vector<8x32xf32>
    %89 = vector.extract_strided_slice %86 {offsets = [0, 32], sizes = [8, 32], strides = [1, 1]} : vector<8x128xf32> to vector<8x32xf32>
    %90 = vector.extract_strided_slice %87 {offsets = [0, 64], sizes = [8, 32], strides = [1, 1]} : vector<8x128xf32> to vector<8x32xf32>
    %91 = vector.extract_strided_slice %86 {offsets = [0, 96], sizes = [8, 32], strides = [1, 1]} : vector<8x128xf32> to vector<8x32xf32>
    %92 = arith.mulf %89, %56 : vector<8x32xf32>
    %93 = arith.mulf %88, %90 : vector<8x32xf32>
    %94 = arith.addf %92, %93 : vector<8x32xf32>
    %95 = math.tanh %94 : vector<8x32xf32>
    %96 = arith.mulf %91, %95 : vector<8x32xf32>
    %cst_28 = arith.constant dense<0.000000e+00> : vector<8x128xf32>
    %97 = tpu.matmul %77, %1, %cst_28 {dimension_numbers = #tpu.dot_dimension_numbers<[1], [0], [0], [1], [0, 0, 1, 1], [], []>} : vector<8x32xf32>, vector<32x128xf32>, vector<8x128xf32> -> vector<8x128xf32>
    %98 = vector.extract_strided_slice %19 {offsets = [2, 0, 0], sizes = [1, 8, 128], strides = [1, 1, 1]} : vector<8x8x128xf32> to vector<1x8x128xf32>
    %99 = vector.shape_cast %98 : vector<1x8x128xf32> to vector<8x128xf32>
    %100 = arith.addf %97, %99 : vector<8x128xf32>
    %101 = arith.negf %100 : vector<8x128xf32>
    %102 = math.exp %101 : vector<8x128xf32>
    %cst_29 = arith.constant 1.000000e+00 : f32
    %103 = vector.broadcast %cst_29 : f32 to vector<8x128xf32>
    %104 = arith.addf %103, %102 : vector<8x128xf32>
    %105 = arith.divf %103, %104 : vector<8x128xf32>
    %106 = math.tanh %100 : vector<8x128xf32>
    %107 = vector.extract_strided_slice %105 {offsets = [0, 0], sizes = [8, 32], strides = [1, 1]} : vector<8x128xf32> to vector<8x32xf32>
    %108 = vector.extract_strided_slice %105 {offsets = [0, 32], sizes = [8, 32], strides = [1, 1]} : vector<8x128xf32> to vector<8x32xf32>
    %109 = vector.extract_strided_slice %106 {offsets = [0, 64], sizes = [8, 32], strides = [1, 1]} : vector<8x128xf32> to vector<8x32xf32>
    %110 = vector.extract_strided_slice %105 {offsets = [0, 96], sizes = [8, 32], strides = [1, 1]} : vector<8x128xf32> to vector<8x32xf32>
    %111 = arith.mulf %108, %75 : vector<8x32xf32>
    %112 = arith.mulf %107, %109 : vector<8x32xf32>
    %113 = arith.addf %111, %112 : vector<8x32xf32>
    %114 = math.tanh %113 : vector<8x32xf32>
    %115 = arith.mulf %110, %114 : vector<8x32xf32>
    %cst_30 = arith.constant dense<0.000000e+00> : vector<8x128xf32>
    %116 = tpu.matmul %96, %5, %cst_30 {dimension_numbers = #tpu.dot_dimension_numbers<[1], [0], [0], [1], [0, 0, 1, 1], [], []>} : vector<8x32xf32>, vector<32x128xf32>, vector<8x128xf32> -> vector<8x128xf32>
    %cst_31 = arith.constant dense<0.000000e+00> : vector<8x128xf32>
    %117 = tpu.matmul %115, %3, %cst_31 {dimension_numbers = #tpu.dot_dimension_numbers<[1], [0], [0], [1], [0, 0, 1, 1], [], []>} : vector<8x32xf32>, vector<32x128xf32>, vector<8x128xf32> -> vector<8x128xf32>
    %118 = arith.addf %117, %116 : vector<8x128xf32>
    %119 = arith.addf %118, %9 : vector<8x128xf32>
    %120 = arith.negf %119 : vector<8x128xf32>
    %121 = math.exp %120 : vector<8x128xf32>
    %cst_32 = arith.constant 1.000000e+00 : f32
    %122 = vector.broadcast %cst_32 : f32 to vector<8x128xf32>
    %123 = arith.addf %122, %121 : vector<8x128xf32>
    %124 = arith.divf %122, %123 : vector<8x128xf32>
    %125 = math.tanh %119 : vector<8x128xf32>
    %126 = vector.extract_strided_slice %124 {offsets = [0, 0], sizes = [8, 32], strides = [1, 1]} : vector<8x128xf32> to vector<8x32xf32>
    %127 = vector.extract_strided_slice %124 {offsets = [0, 32], sizes = [8, 32], strides = [1, 1]} : vector<8x128xf32> to vector<8x32xf32>
    %128 = vector.extract_strided_slice %125 {offsets = [0, 64], sizes = [8, 32], strides = [1, 1]} : vector<8x128xf32> to vector<8x32xf32>
    %129 = vector.extract_strided_slice %124 {offsets = [0, 96], sizes = [8, 32], strides = [1, 1]} : vector<8x128xf32> to vector<8x32xf32>
    %130 = arith.mulf %127, %94 : vector<8x32xf32>
    %131 = arith.mulf %126, %128 : vector<8x32xf32>
    %132 = arith.addf %130, %131 : vector<8x32xf32>
    %133 = math.tanh %132 : vector<8x32xf32>
    %134 = arith.mulf %129, %133 : vector<8x32xf32>
    %cst_33 = arith.constant dense<0.000000e+00> : vector<8x128xf32>
    %135 = tpu.matmul %115, %1, %cst_33 {dimension_numbers = #tpu.dot_dimension_numbers<[1], [0], [0], [1], [0, 0, 1, 1], [], []>} : vector<8x32xf32>, vector<32x128xf32>, vector<8x128xf32> -> vector<8x128xf32>
    %136 = vector.extract_strided_slice %19 {offsets = [3, 0, 0], sizes = [1, 8, 128], strides = [1, 1, 1]} : vector<8x8x128xf32> to vector<1x8x128xf32>
    %137 = vector.shape_cast %136 : vector<1x8x128xf32> to vector<8x128xf32>
    %138 = arith.addf %135, %137 : vector<8x128xf32>
    %139 = arith.negf %138 : vector<8x128xf32>
    %140 = math.exp %139 : vector<8x128xf32>
    %cst_34 = arith.constant 1.000000e+00 : f32
    %141 = vector.broadcast %cst_34 : f32 to vector<8x128xf32>
    %142 = arith.addf %141, %140 : vector<8x128xf32>
    %143 = arith.divf %141, %142 : vector<8x128xf32>
    %144 = math.tanh %138 : vector<8x128xf32>
    %145 = vector.extract_strided_slice %143 {offsets = [0, 0], sizes = [8, 32], strides = [1, 1]} : vector<8x128xf32> to vector<8x32xf32>
    %146 = vector.extract_strided_slice %143 {offsets = [0, 32], sizes = [8, 32], strides = [1, 1]} : vector<8x128xf32> to vector<8x32xf32>
    %147 = vector.extract_strided_slice %144 {offsets = [0, 64], sizes = [8, 32], strides = [1, 1]} : vector<8x128xf32> to vector<8x32xf32>
    %148 = vector.extract_strided_slice %143 {offsets = [0, 96], sizes = [8, 32], strides = [1, 1]} : vector<8x128xf32> to vector<8x32xf32>
    %149 = arith.mulf %146, %113 : vector<8x32xf32>
    %150 = arith.mulf %145, %147 : vector<8x32xf32>
    %151 = arith.addf %149, %150 : vector<8x32xf32>
    %152 = math.tanh %151 : vector<8x32xf32>
    %153 = arith.mulf %148, %152 : vector<8x32xf32>
    %cst_35 = arith.constant dense<0.000000e+00> : vector<8x128xf32>
    %154 = tpu.matmul %134, %5, %cst_35 {dimension_numbers = #tpu.dot_dimension_numbers<[1], [0], [0], [1], [0, 0, 1, 1], [], []>} : vector<8x32xf32>, vector<32x128xf32>, vector<8x128xf32> -> vector<8x128xf32>
    %cst_36 = arith.constant dense<0.000000e+00> : vector<8x128xf32>
    %155 = tpu.matmul %153, %3, %cst_36 {dimension_numbers = #tpu.dot_dimension_numbers<[1], [0], [0], [1], [0, 0, 1, 1], [], []>} : vector<8x32xf32>, vector<32x128xf32>, vector<8x128xf32> -> vector<8x128xf32>
    %156 = arith.addf %155, %154 : vector<8x128xf32>
    %157 = arith.addf %156, %9 : vector<8x128xf32>
    %158 = arith.negf %157 : vector<8x128xf32>
    %159 = math.exp %158 : vector<8x128xf32>
    %cst_37 = arith.constant 1.000000e+00 : f32
    %160 = vector.broadcast %cst_37 : f32 to vector<8x128xf32>
    %161 = arith.addf %160, %159 : vector<8x128xf32>
    %162 = arith.divf %160, %161 : vector<8x128xf32>
    %163 = math.tanh %157 : vector<8x128xf32>
    %164 = vector.extract_strided_slice %162 {offsets = [0, 0], sizes = [8, 32], strides = [1, 1]} : vector<8x128xf32> to vector<8x32xf32>
    %165 = vector.extract_strided_slice %162 {offsets = [0, 32], sizes = [8, 32], strides = [1, 1]} : vector<8x128xf32> to vector<8x32xf32>
    %166 = vector.extract_strided_slice %163 {offsets = [0, 64], sizes = [8, 32], strides = [1, 1]} : vector<8x128xf32> to vector<8x32xf32>
    %167 = vector.extract_strided_slice %162 {offsets = [0, 96], sizes = [8, 32], strides = [1, 1]} : vector<8x128xf32> to vector<8x32xf32>
    %168 = arith.mulf %165, %132 : vector<8x32xf32>
    %169 = arith.mulf %164, %166 : vector<8x32xf32>
    %170 = arith.addf %168, %169 : vector<8x32xf32>
    %171 = math.tanh %170 : vector<8x32xf32>
    %172 = arith.mulf %167, %171 : vector<8x32xf32>
    %cst_38 = arith.constant dense<0.000000e+00> : vector<8x128xf32>
    %173 = tpu.matmul %153, %1, %cst_38 {dimension_numbers = #tpu.dot_dimension_numbers<[1], [0], [0], [1], [0, 0, 1, 1], [], []>} : vector<8x32xf32>, vector<32x128xf32>, vector<8x128xf32> -> vector<8x128xf32>
    %174 = vector.extract_strided_slice %19 {offsets = [4, 0, 0], sizes = [1, 8, 128], strides = [1, 1, 1]} : vector<8x8x128xf32> to vector<1x8x128xf32>
    %175 = vector.shape_cast %174 : vector<1x8x128xf32> to vector<8x128xf32>
    %176 = arith.addf %173, %175 : vector<8x128xf32>
    %177 = arith.negf %176 : vector<8x128xf32>
    %178 = math.exp %177 : vector<8x128xf32>
    %cst_39 = arith.constant 1.000000e+00 : f32
    %179 = vector.broadcast %cst_39 : f32 to vector<8x128xf32>
    %180 = arith.addf %179, %178 : vector<8x128xf32>
    %181 = arith.divf %179, %180 : vector<8x128xf32>
    %182 = math.tanh %176 : vector<8x128xf32>
    %183 = vector.extract_strided_slice %181 {offsets = [0, 0], sizes = [8, 32], strides = [1, 1]} : vector<8x128xf32> to vector<8x32xf32>
    %184 = vector.extract_strided_slice %181 {offsets = [0, 32], sizes = [8, 32], strides = [1, 1]} : vector<8x128xf32> to vector<8x32xf32>
    %185 = vector.extract_strided_slice %182 {offsets = [0, 64], sizes = [8, 32], strides = [1, 1]} : vector<8x128xf32> to vector<8x32xf32>
    %186 = vector.extract_strided_slice %181 {offsets = [0, 96], sizes = [8, 32], strides = [1, 1]} : vector<8x128xf32> to vector<8x32xf32>
    %187 = arith.mulf %184, %151 : vector<8x32xf32>
    %188 = arith.mulf %183, %185 : vector<8x32xf32>
    %189 = arith.addf %187, %188 : vector<8x32xf32>
    %190 = math.tanh %189 : vector<8x32xf32>
    %191 = arith.mulf %186, %190 : vector<8x32xf32>
    %cst_40 = arith.constant dense<0.000000e+00> : vector<8x128xf32>
    %192 = tpu.matmul %172, %5, %cst_40 {dimension_numbers = #tpu.dot_dimension_numbers<[1], [0], [0], [1], [0, 0, 1, 1], [], []>} : vector<8x32xf32>, vector<32x128xf32>, vector<8x128xf32> -> vector<8x128xf32>
    %cst_41 = arith.constant dense<0.000000e+00> : vector<8x128xf32>
    %193 = tpu.matmul %191, %3, %cst_41 {dimension_numbers = #tpu.dot_dimension_numbers<[1], [0], [0], [1], [0, 0, 1, 1], [], []>} : vector<8x32xf32>, vector<32x128xf32>, vector<8x128xf32> -> vector<8x128xf32>
    %194 = arith.addf %193, %192 : vector<8x128xf32>
    %195 = arith.addf %194, %9 : vector<8x128xf32>
    %196 = arith.negf %195 : vector<8x128xf32>
    %197 = math.exp %196 : vector<8x128xf32>
    %cst_42 = arith.constant 1.000000e+00 : f32
    %198 = vector.broadcast %cst_42 : f32 to vector<8x128xf32>
    %199 = arith.addf %198, %197 : vector<8x128xf32>
    %200 = arith.divf %198, %199 : vector<8x128xf32>
    %201 = math.tanh %195 : vector<8x128xf32>
    %202 = vector.extract_strided_slice %200 {offsets = [0, 0], sizes = [8, 32], strides = [1, 1]} : vector<8x128xf32> to vector<8x32xf32>
    %203 = vector.extract_strided_slice %200 {offsets = [0, 32], sizes = [8, 32], strides = [1, 1]} : vector<8x128xf32> to vector<8x32xf32>
    %204 = vector.extract_strided_slice %201 {offsets = [0, 64], sizes = [8, 32], strides = [1, 1]} : vector<8x128xf32> to vector<8x32xf32>
    %205 = vector.extract_strided_slice %200 {offsets = [0, 96], sizes = [8, 32], strides = [1, 1]} : vector<8x128xf32> to vector<8x32xf32>
    %206 = arith.mulf %203, %170 : vector<8x32xf32>
    %207 = arith.mulf %202, %204 : vector<8x32xf32>
    %208 = arith.addf %206, %207 : vector<8x32xf32>
    %209 = math.tanh %208 : vector<8x32xf32>
    %210 = arith.mulf %205, %209 : vector<8x32xf32>
    %cst_43 = arith.constant dense<0.000000e+00> : vector<8x128xf32>
    %211 = tpu.matmul %191, %1, %cst_43 {dimension_numbers = #tpu.dot_dimension_numbers<[1], [0], [0], [1], [0, 0, 1, 1], [], []>} : vector<8x32xf32>, vector<32x128xf32>, vector<8x128xf32> -> vector<8x128xf32>
    %212 = vector.extract_strided_slice %19 {offsets = [5, 0, 0], sizes = [1, 8, 128], strides = [1, 1, 1]} : vector<8x8x128xf32> to vector<1x8x128xf32>
    %213 = vector.shape_cast %212 : vector<1x8x128xf32> to vector<8x128xf32>
    %214 = arith.addf %211, %213 : vector<8x128xf32>
    %215 = arith.negf %214 : vector<8x128xf32>
    %216 = math.exp %215 : vector<8x128xf32>
    %cst_44 = arith.constant 1.000000e+00 : f32
    %217 = vector.broadcast %cst_44 : f32 to vector<8x128xf32>
    %218 = arith.addf %217, %216 : vector<8x128xf32>
    %219 = arith.divf %217, %218 : vector<8x128xf32>
    %220 = math.tanh %214 : vector<8x128xf32>
    %221 = vector.extract_strided_slice %219 {offsets = [0, 0], sizes = [8, 32], strides = [1, 1]} : vector<8x128xf32> to vector<8x32xf32>
    %222 = vector.extract_strided_slice %219 {offsets = [0, 32], sizes = [8, 32], strides = [1, 1]} : vector<8x128xf32> to vector<8x32xf32>
    %223 = vector.extract_strided_slice %220 {offsets = [0, 64], sizes = [8, 32], strides = [1, 1]} : vector<8x128xf32> to vector<8x32xf32>
    %224 = vector.extract_strided_slice %219 {offsets = [0, 96], sizes = [8, 32], strides = [1, 1]} : vector<8x128xf32> to vector<8x32xf32>
    %225 = arith.mulf %222, %189 : vector<8x32xf32>
    %226 = arith.mulf %221, %223 : vector<8x32xf32>
    %227 = arith.addf %225, %226 : vector<8x32xf32>
    %228 = math.tanh %227 : vector<8x32xf32>
    %229 = arith.mulf %224, %228 : vector<8x32xf32>
    %cst_45 = arith.constant dense<0.000000e+00> : vector<8x128xf32>
    %230 = tpu.matmul %210, %5, %cst_45 {dimension_numbers = #tpu.dot_dimension_numbers<[1], [0], [0], [1], [0, 0, 1, 1], [], []>} : vector<8x32xf32>, vector<32x128xf32>, vector<8x128xf32> -> vector<8x128xf32>
    %cst_46 = arith.constant dense<0.000000e+00> : vector<8x128xf32>
    %231 = tpu.matmul %229, %3, %cst_46 {dimension_numbers = #tpu.dot_dimension_numbers<[1], [0], [0], [1], [0, 0, 1, 1], [], []>} : vector<8x32xf32>, vector<32x128xf32>, vector<8x128xf32> -> vector<8x128xf32>
    %232 = arith.addf %231, %230 : vector<8x128xf32>
    %233 = arith.addf %232, %9 : vector<8x128xf32>
    %234 = arith.negf %233 : vector<8x128xf32>
    %235 = math.exp %234 : vector<8x128xf32>
    %cst_47 = arith.constant 1.000000e+00 : f32
    %236 = vector.broadcast %cst_47 : f32 to vector<8x128xf32>
    %237 = arith.addf %236, %235 : vector<8x128xf32>
    %238 = arith.divf %236, %237 : vector<8x128xf32>
    %239 = math.tanh %233 : vector<8x128xf32>
    %240 = vector.extract_strided_slice %238 {offsets = [0, 0], sizes = [8, 32], strides = [1, 1]} : vector<8x128xf32> to vector<8x32xf32>
    %241 = vector.extract_strided_slice %238 {offsets = [0, 32], sizes = [8, 32], strides = [1, 1]} : vector<8x128xf32> to vector<8x32xf32>
    %242 = vector.extract_strided_slice %239 {offsets = [0, 64], sizes = [8, 32], strides = [1, 1]} : vector<8x128xf32> to vector<8x32xf32>
    %243 = vector.extract_strided_slice %238 {offsets = [0, 96], sizes = [8, 32], strides = [1, 1]} : vector<8x128xf32> to vector<8x32xf32>
    %244 = arith.mulf %241, %208 : vector<8x32xf32>
    %245 = arith.mulf %240, %242 : vector<8x32xf32>
    %246 = arith.addf %244, %245 : vector<8x32xf32>
    %247 = math.tanh %246 : vector<8x32xf32>
    %248 = arith.mulf %243, %247 : vector<8x32xf32>
    %cst_48 = arith.constant dense<0.000000e+00> : vector<8x128xf32>
    %249 = tpu.matmul %229, %1, %cst_48 {dimension_numbers = #tpu.dot_dimension_numbers<[1], [0], [0], [1], [0, 0, 1, 1], [], []>} : vector<8x32xf32>, vector<32x128xf32>, vector<8x128xf32> -> vector<8x128xf32>
    %250 = vector.extract_strided_slice %19 {offsets = [6, 0, 0], sizes = [1, 8, 128], strides = [1, 1, 1]} : vector<8x8x128xf32> to vector<1x8x128xf32>
    %251 = vector.shape_cast %250 : vector<1x8x128xf32> to vector<8x128xf32>
    %252 = arith.addf %249, %251 : vector<8x128xf32>
    %253 = arith.negf %252 : vector<8x128xf32>
    %254 = math.exp %253 : vector<8x128xf32>
    %cst_49 = arith.constant 1.000000e+00 : f32
    %255 = vector.broadcast %cst_49 : f32 to vector<8x128xf32>
    %256 = arith.addf %255, %254 : vector<8x128xf32>
    %257 = arith.divf %255, %256 : vector<8x128xf32>
    %258 = math.tanh %252 : vector<8x128xf32>
    %259 = vector.extract_strided_slice %257 {offsets = [0, 0], sizes = [8, 32], strides = [1, 1]} : vector<8x128xf32> to vector<8x32xf32>
    %260 = vector.extract_strided_slice %257 {offsets = [0, 32], sizes = [8, 32], strides = [1, 1]} : vector<8x128xf32> to vector<8x32xf32>
    %261 = vector.extract_strided_slice %258 {offsets = [0, 64], sizes = [8, 32], strides = [1, 1]} : vector<8x128xf32> to vector<8x32xf32>
    %262 = vector.extract_strided_slice %257 {offsets = [0, 96], sizes = [8, 32], strides = [1, 1]} : vector<8x128xf32> to vector<8x32xf32>
    %263 = arith.mulf %260, %227 : vector<8x32xf32>
    %264 = arith.mulf %259, %261 : vector<8x32xf32>
    %265 = arith.addf %263, %264 : vector<8x32xf32>
    %266 = math.tanh %265 : vector<8x32xf32>
    %267 = arith.mulf %262, %266 : vector<8x32xf32>
    %cst_50 = arith.constant dense<0.000000e+00> : vector<8x128xf32>
    %268 = tpu.matmul %248, %5, %cst_50 {dimension_numbers = #tpu.dot_dimension_numbers<[1], [0], [0], [1], [0, 0, 1, 1], [], []>} : vector<8x32xf32>, vector<32x128xf32>, vector<8x128xf32> -> vector<8x128xf32>
    %cst_51 = arith.constant dense<0.000000e+00> : vector<8x128xf32>
    %269 = tpu.matmul %267, %3, %cst_51 {dimension_numbers = #tpu.dot_dimension_numbers<[1], [0], [0], [1], [0, 0, 1, 1], [], []>} : vector<8x32xf32>, vector<32x128xf32>, vector<8x128xf32> -> vector<8x128xf32>
    %270 = arith.addf %269, %268 : vector<8x128xf32>
    %271 = arith.addf %270, %9 : vector<8x128xf32>
    %272 = arith.negf %271 : vector<8x128xf32>
    %273 = math.exp %272 : vector<8x128xf32>
    %cst_52 = arith.constant 1.000000e+00 : f32
    %274 = vector.broadcast %cst_52 : f32 to vector<8x128xf32>
    %275 = arith.addf %274, %273 : vector<8x128xf32>
    %276 = arith.divf %274, %275 : vector<8x128xf32>
    %277 = math.tanh %271 : vector<8x128xf32>
    %278 = vector.extract_strided_slice %276 {offsets = [0, 0], sizes = [8, 32], strides = [1, 1]} : vector<8x128xf32> to vector<8x32xf32>
    %279 = vector.extract_strided_slice %276 {offsets = [0, 32], sizes = [8, 32], strides = [1, 1]} : vector<8x128xf32> to vector<8x32xf32>
    %280 = vector.extract_strided_slice %277 {offsets = [0, 64], sizes = [8, 32], strides = [1, 1]} : vector<8x128xf32> to vector<8x32xf32>
    %281 = vector.extract_strided_slice %276 {offsets = [0, 96], sizes = [8, 32], strides = [1, 1]} : vector<8x128xf32> to vector<8x32xf32>
    %282 = arith.mulf %279, %246 : vector<8x32xf32>
    %283 = arith.mulf %278, %280 : vector<8x32xf32>
    %284 = arith.addf %282, %283 : vector<8x32xf32>
    %285 = math.tanh %284 : vector<8x32xf32>
    %286 = arith.mulf %281, %285 : vector<8x32xf32>
    %cst_53 = arith.constant dense<0.000000e+00> : vector<8x128xf32>
    %287 = tpu.matmul %267, %1, %cst_53 {dimension_numbers = #tpu.dot_dimension_numbers<[1], [0], [0], [1], [0, 0, 1, 1], [], []>} : vector<8x32xf32>, vector<32x128xf32>, vector<8x128xf32> -> vector<8x128xf32>
    %288 = vector.extract_strided_slice %19 {offsets = [7, 0, 0], sizes = [1, 8, 128], strides = [1, 1, 1]} : vector<8x8x128xf32> to vector<1x8x128xf32>
    %289 = vector.shape_cast %288 : vector<1x8x128xf32> to vector<8x128xf32>
    %290 = arith.addf %287, %289 : vector<8x128xf32>
    %291 = arith.negf %290 : vector<8x128xf32>
    %292 = math.exp %291 : vector<8x128xf32>
    %cst_54 = arith.constant 1.000000e+00 : f32
    %293 = vector.broadcast %cst_54 : f32 to vector<8x128xf32>
    %294 = arith.addf %293, %292 : vector<8x128xf32>
    %295 = arith.divf %293, %294 : vector<8x128xf32>
    %296 = math.tanh %290 : vector<8x128xf32>
    %297 = vector.extract_strided_slice %295 {offsets = [0, 0], sizes = [8, 32], strides = [1, 1]} : vector<8x128xf32> to vector<8x32xf32>
    %298 = vector.extract_strided_slice %295 {offsets = [0, 32], sizes = [8, 32], strides = [1, 1]} : vector<8x128xf32> to vector<8x32xf32>
    %299 = vector.extract_strided_slice %296 {offsets = [0, 64], sizes = [8, 32], strides = [1, 1]} : vector<8x128xf32> to vector<8x32xf32>
    %300 = vector.extract_strided_slice %295 {offsets = [0, 96], sizes = [8, 32], strides = [1, 1]} : vector<8x128xf32> to vector<8x32xf32>
    %301 = arith.mulf %298, %265 : vector<8x32xf32>
    %302 = arith.mulf %297, %299 : vector<8x32xf32>
    %303 = arith.addf %301, %302 : vector<8x32xf32>
    %304 = math.tanh %303 : vector<8x32xf32>
    %305 = arith.mulf %300, %304 : vector<8x32xf32>
    %cst_55 = arith.constant dense<0.000000e+00> : vector<8x128xf32>
    %306 = tpu.matmul %286, %5, %cst_55 {dimension_numbers = #tpu.dot_dimension_numbers<[1], [0], [0], [1], [0, 0, 1, 1], [], []>} : vector<8x32xf32>, vector<32x128xf32>, vector<8x128xf32> -> vector<8x128xf32>
    %cst_56 = arith.constant dense<0.000000e+00> : vector<8x128xf32>
    %307 = tpu.matmul %305, %3, %cst_56 {dimension_numbers = #tpu.dot_dimension_numbers<[1], [0], [0], [1], [0, 0, 1, 1], [], []>} : vector<8x32xf32>, vector<32x128xf32>, vector<8x128xf32> -> vector<8x128xf32>
    %308 = arith.addf %307, %306 : vector<8x128xf32>
    %309 = arith.addf %308, %9 : vector<8x128xf32>
    %310 = arith.negf %309 : vector<8x128xf32>
    %311 = math.exp %310 : vector<8x128xf32>
    %cst_57 = arith.constant 1.000000e+00 : f32
    %312 = vector.broadcast %cst_57 : f32 to vector<8x128xf32>
    %313 = arith.addf %312, %311 : vector<8x128xf32>
    %314 = arith.divf %312, %313 : vector<8x128xf32>
    %315 = math.tanh %309 : vector<8x128xf32>
    %316 = vector.extract_strided_slice %314 {offsets = [0, 0], sizes = [8, 32], strides = [1, 1]} : vector<8x128xf32> to vector<8x32xf32>
    %317 = vector.extract_strided_slice %314 {offsets = [0, 32], sizes = [8, 32], strides = [1, 1]} : vector<8x128xf32> to vector<8x32xf32>
    %318 = vector.extract_strided_slice %315 {offsets = [0, 64], sizes = [8, 32], strides = [1, 1]} : vector<8x128xf32> to vector<8x32xf32>
    %319 = vector.extract_strided_slice %314 {offsets = [0, 96], sizes = [8, 32], strides = [1, 1]} : vector<8x128xf32> to vector<8x32xf32>
    %320 = arith.mulf %317, %284 : vector<8x32xf32>
    %321 = arith.mulf %316, %318 : vector<8x32xf32>
    %322 = arith.addf %320, %321 : vector<8x32xf32>
    %323 = math.tanh %322 : vector<8x32xf32>
    %324 = arith.mulf %319, %323 : vector<8x32xf32>
    %cst_58 = arith.constant dense<0.000000e+00> : vector<8x3xf32>
    %325 = tpu.matmul %324, %10, %cst_58 {dimension_numbers = #tpu.dot_dimension_numbers<[1], [0], [0], [1], [0, 0, 1, 1], [], []>} : vector<8x32xf32>, vector<32x3xf32>, vector<8x3xf32> -> vector<8x3xf32>
    %326 = vector.broadcast %11 : vector<1x3xf32> to vector<8x3xf32>
    %327 = arith.addf %325, %326 : vector<8x3xf32>
    %c0_59 = arith.constant 0 : index
    %c0_60 = arith.constant 0 : index
    %328 = vector.load %arg7[%c0_59, %c0_60] : memref<8x3xf32, #tpu.memory_space<vmem>>, vector<8x3xf32>
    tpu.vector_store %arg7[%c0_59, %c0_60], %327 {strides = array<i32>} : memref<8x3xf32, #tpu.memory_space<vmem>>, vector<8x3xf32>,
    return
  }
  func.func @transform_0(%arg0: i32) -> (i32, i32, i32) {
    %c0_i32 = arith.constant 0 : i32
    %c0_i32_0 = arith.constant 0 : i32
    %c0_i32_1 = arith.constant 0 : i32
    return %c0_i32, %arg0, %c0_i32_0 : i32, i32, i32
  }
  func.func @transform_1(%arg0: i32) -> (i32, i32) {
    %c0_i32 = arith.constant 0 : i32
    %c0_i32_0 = arith.constant 0 : i32
    %c0_i32_1 = arith.constant 0 : i32
    return %c0_i32, %c0_i32_0 : i32, i32
  }
  func.func @transform_2(%arg0: i32) -> (i32, i32, i32) {
    %c0_i32 = arith.constant 0 : i32
    %c0_i32_0 = arith.constant 0 : i32
    %c0_i32_1 = arith.constant 0 : i32
    %c0_i32_2 = arith.constant 0 : i32
    return %c0_i32, %c0_i32_0, %c0_i32_1 : i32, i32, i32
  }
  func.func @transform_3(%arg0: i32) -> (i32, i32) {
    %c0_i32 = arith.constant 0 : i32
    %c0_i32_0 = arith.constant 0 : i32
    %c0_i32_1 = arith.constant 0 : i32
    return %c0_i32, %c0_i32_0 : i32, i32
  }
  func.func @transform_4(%arg0: i32) -> (i32, i32) {
    %c0_i32 = arith.constant 0 : i32
    %c0_i32_0 = arith.constant 0 : i32
    %c0_i32_1 = arith.constant 0 : i32
    return %c0_i32, %c0_i32_0 : i32, i32
  }
  func.func @transform_5(%arg0: i32) -> (i32, i32) {
    %c0_i32 = arith.constant 0 : i32
    %c0_i32_0 = arith.constant 0 : i32
    %c0_i32_1 = arith.constant 0 : i32
    return %c0_i32, %c0_i32_0 : i32, i32
  }
  func.func @transform_6(%arg0: i32) -> (i32, i32) {
    %c0_i32 = arith.constant 0 : i32
    %c0_i32_0 = arith.constant 0 : i32
    return %arg0, %c0_i32 : i32, i32
  }
}

</mosaic_0001>

<bundles_post_ra>
// kernel: tpu_custom_call.1
= control target key start
LH: loop header
LB: loop body
LE: loop exit
PB: predicated region body
PF: predicated region fallthrough
CT: control target
= control target key end

     0   :  { %vm85_vm0 = vcmask 1043456   ;;  %vm60_vm1 = vcmask 31744   ;;  %v3195_v0 = vmov 0.0|0.0   ;;  %vm3196_vm2 = vmmov 0   ;;  %s3198_s12 = smov 64   ;;  %s3679_s2 = inlined_call_operand.vmem [shape: f32[3,32,128], index: 2, kind: input, shape index: {}]   ;;  %s3680_s1 = inlined_call_operand.vmem [shape: f32[4,128], index: 1, kind: input, shape index: {}]   ;;  %s3681_s0 = inlined_call_operand.vmem [shape: f32[8,8,4], index: 0, kind: input, shape index: {}]   ;;  %s3682_s3 = inlined_call_operand.vmem [shape: f32[2,128], index: 3, kind: input, shape index: {}]   ;;  %s3683_s4 = inlined_call_operand.vmem [shape: f32[32,3], index: 4, kind: input, shape index: {}]   ;;  %s3684_s5 = inlined_call_operand.vmem [shape: f32[1,3], index: 5, kind: input, shape index: {}]   ;;  %s3685_s6 = inlined_call_operand.vmem [shape: f32[8,3], index: 6, kind: output, shape index: {}]  }
   0x1   :  { %2912 = vmatprep.subr.bf16.mxu1 %v3195_v0  ;;  %v23_v1 = vld [vmem:[%s3679_s2] sm:$0xff]  ;;  %v24_v2 = vld [vmem:[%s3679_s2 + $0x8] sm:$0xff]  ;;  %v25_v7 = vld [vmem:[%s3679_s2 + $0x10] sm:$0xff]  ;;  %v3197_v8 = vmov 0.0   ;;  %v38_v11 = vlaneseq  ;;  %vm194_vm3 = vcmask 261120   ;;  %vm2426_vm4 = vcmask 23552  }
   0x2   :  { %v55_v3 = vld [vmem:[%s3680_s1] sm:$0xf]  ;;  %v3245_v4 = vpack.c.bf16 %v24_v2, %v23_v1  ;;  %v48_v6 = vld [vmem:[%s3681_s0 + $0x8] sm:$0xff]  ;;  %2645 = vmatprep.mubr.msk.f32.mxu1 %vm3196_vm2, %v3197_v8  ;;  %v26_v9 = vld [vmem:[%s3679_s2 + $0x18] sm:$0xff] }
   0x3   :  { %2623 = vmatprep.subr.msk.mxu0 %vm85_vm0, %v55_v3  ;;  %v47_v5 = vld [vmem:[%s3681_s0] sm:$0xff]  ;;  %v3266_v10 = vpack.c.bf16 %v26_v9, %v25_v7  ;;  %v3275_v12 = vshrl.u32 %v38_v11, 7  ;;  %v2433_v33 = vld [vmem:[%s3679_s2 + $0x28] sm:$0xff]  ;;  %v49_v37 = vld [vmem:[%s3681_s0 + $0x10] sm:$0xff] }
   0x4   :  { %2624 = vmatpush3.msk.msra.mxu0 %vm85_vm0, %v55_v3  ;;  %2625 = vmatprep.mubr.msk.f32.mxu0 %vm60_vm1, %v47_v5  ;;  %v3281_v14 = vld [vmem:[%s3682_s3] sm:$0x3]  ;;  %s3199_s3 = smov 32   ;;  %v2437_v36 = vld [vmem:[%s3679_s2 + $0x48] sm:$0xff]  ;;  %v50_v38 = vld [vmem:[%s3681_s0 + $0x18] sm:$0xff] }
   0x5   :  { %2914 = vmatpush3.bf16.msra.mxu1 %v3245_v4  ;;  %2626 = vmatmul.mubr.msk.f32.vlgmr.msra.gmra.mrb[0].mxu0 %vm60_vm1, %v48_v6  ;;  %v58_v13 = vsub.s32 0, %v3275_v12  ;;  %v2432_v32 = vld [vmem:[%s3679_s2 + $0x20] sm:$0xff]  ;;  %v2438_v40 = vld [vmem:[%s3679_s2 + $0x50] sm:$0xff]  ;;  %v2439_v41 = vld [vmem:[%s3679_s2 + $0x58] sm:$0xff]  ;;  %v40_v62 = vsub.s32 1, %v3275_v12 }
   0x6   :  { %2915 = vmatprep.subr.bf16.mxu1 %v3195_v0  ;;  %2924 = vmatprep.subr.bf16.mxu0 %v3195_v0  ;;  %v2436_v34 = vld [vmem:[%s3679_s2 + $0x40] sm:$0xff]  ;;  %v3303_v35 = vpack.c.bf16 %v2433_v33, %v2432_v32  ;;  %v2434_v43 = vld [vmem:[%s3679_s2 + $0x30] sm:$0xff]  ;;  %v2435_v44 = vld [vmem:[%s3679_s2 + $0x38] sm:$0xff]  ;;  %v3335_v45 = vpack.c.bf16 %v2439_v41, %v2438_v40 }
   0x7   :  { %v3284_v15 = vrot.slane %v3281_v14, %v58_v13  ;;  %v3314_v39 = vpack.c.bf16 %v2437_v36, %v2436_v34  ;;  %2628 = vmatprep.mubr.msk.f32.mxu0 %vm60_vm1, %v49_v37  ;;  %v51_v42 = vld [vmem:[%s3681_s0 + $0x20] sm:$0xff]  ;;  %v3337_v46 = vpack.c.bf16 %v2435_v44, %v2434_v43  ;;  %v52_v47 = vld [vmem:[%s3681_s0 + $0x28] sm:$0xff]  ;;  %v53_v48 = vld [vmem:[%s3681_s0 + $0x30] sm:$0xff]  ;;  %v3399_v1 = vrot.slane %v3281_v14, %v40_v62 }
   0x8   :  { %2926 = vmatpush3.bf16.msra.mxu0 %v3303_v35  ;;  %v54_v49 = vld [vmem:[%s3681_s0 + $0x38] sm:$0xff] }
   0x9   :  { %2917 = vmatpush3.bf16.msra.mxu1 %v3266_v10  ;;  %2629 = vmatmul.mubr.msk.f32.gmra.mrb[2].mxu0 %vm60_vm1, %v50_v38 }
   0xa   :  { %2918 = vmatprep.subr.bf16.mxu1 %v3195_v0  ;;  %2631 = vmatprep.mubr.msk.f32.mxu0 %vm60_vm1, %v51_v42 }
   0xb   :  { %2927 = vmatprep.subr.bf16.mxu0 %v3195_v0 }
   0xc   :  { %2646 = vmatmul.mubr.f32.vlgmr.msra.gmra.mrb[0].mxu1 %v3197_v8  ;;  %2929 = vmatpush3.bf16.msra.mxu0 %v3337_v46 }
   0xd   :  { %2656 = vmatprep.mubr.msk.f32.mxu1 %vm3196_vm2, %v3197_v8  ;;  %2920 = vmatpush3.bf16.msra.mxu1 %v3314_v39 }
   0xe   :  { %2921 = vmatprep.subr.bf16.mxu1 %v3195_v0  ;;  %2632 = vmatmul.mubr.msk.f32.gmra.mrb[4].mxu0 %vm60_vm1, %v52_v47 }
   0xf   :  { %2634 = vmatprep.mubr.msk.f32.mxu0 %vm60_vm1, %v53_v48  ;;  %2936 = vmatprep.subr.bf16.mxu0 %v3195_v0 }
  0x11   :  { %2923 = vmatpush3.bf16.msra.mxu1 %v3335_v45 }
  0x12   :  { %2930 = vmatprep.subr.bf16.mxu1 %v3195_v0  ;;  %2635 = vmatmul.mubr.msk.f32.gmra.mrb[6].mxu0 %vm60_vm1, %v54_v49 }
  0x13   :  { %2667 = vmatprep.mubr.msk.f32.mxu0 %vm3196_vm2, %v3197_v8 }
  0x14   :  { %2657 = vmatmul.mubr.f32.vlgmr.msra.gmra.mrb[2].mxu1 %v3197_v8 }
  0x15   :  { %2932 = vmatpush3.bf16.msra.mxu1 %v3245_v4  ;;  %2678 = vmatprep.mubr.msk.f32.mxu1 %vm3196_vm2, %v3197_v8 }
  0x16   :  { %2933 = vmatprep.subr.bf16.mxu1 %v3195_v0 }
  0x19   :  { %2935 = vmatpush3.bf16.msra.mxu1 %v3266_v10 }
  0x1a   :  { %2942 = vmatprep.subr.bf16.mxu1 %v3195_v0 }
  0xd8   :  { %v3286_v16 = vpop.f32.mrb[0].mxu0 }
  0xd9   :  { %v155_v17 = vpop.f32.mrb[1].mxu0  ;;  %v161_v63 = vadd.f32 %v3286_v16, %v3284_v15 }
  0xda   :  { %v156_v18 = vadd.f32 %v155_v17, %v3284_v15 }
  0xdc   :  { %v3369_v53 = vpop.f32.mrb[2].mxu0 }
  0xdd   :  { %v3371_v54 = vpop.f32.mrb[3].mxu0 }
  0xdf   :  { %v264_v19 = vpop.f32.mrb[0].mxu1 }
  0xe0   :  { %v265_v20 = vadd.f32 %v264_v19, %v156_v18  ;;  %v2647_v21 = vpop.f32.mrb[1].mxu1 }
  0xe1   :  { %v3373_v55 = vpop.f32.mrb[4].mxu0 }
  0xe2   :  { %3067 = vtanh.f32 %v265_v20  ;;  %v2449_v23 = vmul.f32 -1.442695, %v265_v20  ;;  %v3375_v56 = vpop.f32.mrb[5].mxu0 }
  0xe4   :  { %3069 = vpow2.f32 %v2449_v23 }
  0xe5   :  { %v3377_v58 = vpop.f32.mrb[6].mxu0 }
  0xe6   :  { %v3379_v60 = vpop.f32.mrb[7].mxu0 }
  0xe7   :  { %v358_v57 = vpop.f32.mrb[2].mxu1 }
  0xe8   :  { %v2658_v59 = vpop.f32.mrb[3].mxu1 }
  0xec   :  { %v3068_v22 = vpop.eup %3067 }
  0xed   :  { %277 = vrot.lane.b32.xlu0 %v3068_v22, %s3198_s12 }
  0xee   :  { %v3070_v24 = vpop.eup %3069 }
  0xef   :  { %v271_v25 = vadd.f32 1.0, %v3070_v24 }
  0xf1   :  { %3071 = vrcp.f32 %v271_v25 }
  0xfb   :  { %v3072_v26 = vpop.eup %3071 }
  0xfc   :  { %v275_v29 = vmul.f32 0.0, %v3072_v26 }
 0x15f   :  { %v278_v27 = vpop.permute.xlu0 %277 }
 0x160   :  { %v280_v28 = vmul.f32 %v3072_v26, %v278_v27 }
 0x162   :  { %282 = vrot.lane.b32.xlu0 %v280_v28, %s3199_s3 }
 0x1d4   :  { %v283_v30 = vpop.permute.xlu0 %282 }
 0x1d5   :  { %v3291_v31 = vadd.f32 %v283_v30, %v275_v29 }
 0x1d7   :  { %3073 = vtanh.f32 %v3291_v31 }
 0x1e1   :  { %v3074_v50 = vpop.eup %3073 }
 0x1e2   :  { %288 = vrot.lane.b32.xlu1 %v3074_v50, %s3198_s12 }
 0x254   :  { %v289_v51 = vpop.permute.xlu1 %288 }
 0x255   :  { %v291_v52 = vmul.f32 %v3072_v26, %v289_v51  ;;  %v166_v51 = vadd.f32 %v3371_v54, %v3284_v15 }
 0x257   :  { %363 = vrot.lane.b32.xlu1 %v291_v52, %s3199_s3 }
 0x2c9   :  { %v364_v61 = vpop.permute.xlu1 %363 }
 0x2ca   :  { %2668 = vmatmul.mubr.msk.f32.vlgmr.msra.gmra.mrb[8].mxu0 %vm194_vm3, %v364_v61  ;;  %2679 = vmatmul.mubr.msk.f32.vlgmr.msra.gmra.mrb[4].mxu1 %vm194_vm3, %v364_v61 }
 0x2cb   :  { %2944 = vmatpush3.bf16.msra.mxu1 %v3303_v35  ;;  %2938 = vmatpush3.bf16.msra.mxu0 %v3314_v39 }
 0x2cc   :  { %2945 = vmatprep.subr.bf16.mxu1 %v3195_v0  ;;  %2939 = vmatprep.subr.bf16.mxu0 %v3195_v0 }
 0x2cd   :  { %2700 = vmatprep.mubr.msk.f32.mxu1 %vm3196_vm2, %v3197_v8  ;;  %2689 = vmatprep.mubr.msk.f32.mxu0 %vm3196_vm2, %v3197_v8 }
 0x2cf   :  { %2947 = vmatpush3.bf16.msra.mxu1 %v3337_v46  ;;  %2941 = vmatpush3.bf16.msra.mxu0 %v3335_v45 }
 0x2d0   :  { %2948 = vmatprep.subr.bf16.mxu0 %v3195_v0  ;;  %2954 = vmatprep.subr.bf16.mxu1 %v3195_v0 }
 0x39d   :  { %v433_v2 = vpop.f32.mrb[8].mxu0  ;;  %v528_v3 = vpop.f32.mrb[4].mxu1 }
 0x39e   :  { %v434_v5 = vadd.f32 %v433_v2, %v358_v57  ;;  %v529_v6 = vadd.f32 %v528_v3, %v161_v63  ;;  %v2669_v7 = vpop.f32.mrb[9].mxu0  ;;  %v2680_v9 = vpop.f32.mrb[5].mxu1 }
 0x3a0   :  { %v437_v11 = vadd.f32 %v434_v5, %v3399_v1  ;;  %3075 = vtanh.f32 %v529_v6  ;;  %v2453_v16 = vmul.f32 -1.442695, %v529_v6 }
 0x3a2   :  { %3077 = vtanh.f32 %v437_v11  ;;  %v2451_v17 = vmul.f32 -1.442695, %v437_v11 }
 0x3a3   :  { %3079 = vpow2.f32 %v2453_v16 }
 0x3a4   :  { %3081 = vpow2.f32 %v2451_v17 }
 0x3aa   :  { %v3076_v13 = vpop.eup %3075 }
 0x3ab   :  { %541 = vrot.lane.b32.xlu1 %v3076_v13, %s3198_s12 }
 0x3ac   :  { %v3078_v12 = vpop.eup %3077 }
 0x3ad   :  { %447 = vrot.lane.b32.xlu0 %v3078_v12, %s3198_s12  ;;  %v3080_v14 = vpop.eup %3079 }
 0x3ae   :  { %v3082_v18 = vpop.eup %3081  ;;  %v535_v19 = vadd.f32 1.0, %v3080_v14 }
 0x3af   :  { %v441_v20 = vadd.f32 1.0, %v3082_v18 }
 0x3b0   :  { %3083 = vrcp.f32 %v535_v19 }
 0x3b1   :  { %3085 = vrcp.f32 %v441_v20 }
 0x3ba   :  { %v3084_v21 = vpop.eup %3083 }
 0x3bb   :  { %v3086_v24 = vpop.eup %3085  ;;  %v539_v27 = vmul.f32 %v3084_v21, %v3291_v31 }
 0x3bc   :  { %v445_v30 = vmul.f32 0.0, %v3086_v24 }
 0x41d   :  { %v542_v22 = vpop.permute.xlu1 %541 }
 0x41e   :  { %v544_v23 = vmul.f32 %v3084_v21, %v542_v22 }
 0x41f   :  { %v448_v25 = vpop.permute.xlu0 %447 }
 0x420   :  { %v450_v26 = vmul.f32 %v3086_v24, %v448_v25  ;;  %546 = vrot.lane.b32.xlu1 %v544_v23, %s3199_s3 }
 0x422   :  { %452 = vrot.lane.b32.xlu0 %v450_v26, %s3199_s3 }
 0x492   :  { %v547_v28 = vpop.permute.xlu1 %546 }
 0x493   :  { %v3407_v29 = vadd.f32 %v547_v28, %v539_v27 }
 0x494   :  { %v453_v32 = vpop.permute.xlu0 %452 }
 0x495   :  { %3087 = vtanh.f32 %v3407_v29  ;;  %v3410_v33 = vadd.f32 %v453_v32, %v445_v30 }
 0x497   :  { %3089 = vtanh.f32 %v3410_v33 }
 0x49f   :  { %v3088_v34 = vpop.eup %3087 }
 0x4a0   :  { %552 = vrot.lane.b32.xlu1 %v3088_v34, %s3198_s12  ;;  %v171_v34 = vadd.f32 %v3369_v53, %v3284_v15 }
 0x4a1   :  { %v3090_v36 = vpop.eup %3089 }
 0x4a2   :  { %458 = vrot.lane.b32.xlu0 %v3090_v36, %s3198_s12 }
 0x512   :  { %v553_v37 = vpop.permute.xlu1 %552 }
 0x513   :  { %v555_v38 = vmul.f32 %v3084_v21, %v553_v37 }
 0x514   :  { %v459_v31 = vpop.permute.xlu0 %458 }
 0x515   :  { %v461_v40 = vmul.f32 %v3086_v24, %v459_v31  ;;  %632 = vrot.lane.b32.xlu1 %v555_v38, %s3199_s3 }
 0x517   :  { %557 = vrot.lane.b32.xlu0 %v461_v40, %s3199_s3 }
 0x587   :  { %v633_v41 = vpop.permute.xlu1 %632 }
 0x588   :  { %2701 = vmatmul.mubr.msk.f32.vlgmr.msra.gmra.mrb[6].mxu1 %vm194_vm3, %v633_v41 }
 0x589   :  { %v558_v42 = vpop.permute.xlu0 %557  ;;  %2956 = vmatpush3.bf16.msra.mxu1 %v3314_v39  ;;  %2722 = vmatprep.mubr.msk.f32.mxu1 %vm3196_vm2, %v3197_v8 }
 0x58a   :  { %2690 = vmatmul.mubr.msk.f32.vlgmr.msra.gmra.mrb[10].mxu0 %vm194_vm3, %v558_v42  ;;  %2957 = vmatprep.subr.bf16.mxu1 %v3195_v0 }
 0x58b   :  { %2950 = vmatpush3.bf16.msra.mxu0 %v3245_v4  ;;  %2711 = vmatprep.mubr.msk.f32.mxu0 %vm3196_vm2, %v3197_v8 }
 0x58c   :  { %2951 = vmatprep.subr.bf16.mxu0 %v3195_v0 }
 0x58d   :  { %2959 = vmatpush3.bf16.msra.mxu1 %v3335_v45 }
 0x58e   :  { %2966 = vmatprep.subr.bf16.mxu1 %v3195_v0 }
 0x58f   :  { %2953 = vmatpush3.bf16.msra.mxu0 %v3266_v10 }
 0x590   :  { %2960 = vmatprep.subr.bf16.mxu0 %v3195_v0 }
 0x592   :  { %2712 = vmatmul.mubr.msk.f32.vlgmr.msra.gmra.mrb[12].mxu0 %vm194_vm3, %v633_v41 }
 0x593   :  { %2962 = vmatpush3.bf16.msra.mxu0 %v3303_v35  ;;  %2733 = vmatprep.mubr.msk.f32.mxu0 %vm3196_vm2, %v3197_v8 }
 0x594   :  { %2963 = vmatprep.subr.bf16.mxu0 %v3195_v0 }
 0x597   :  { %2965 = vmatpush3.bf16.msra.mxu0 %v3337_v46 }
 0x598   :  { %2972 = vmatprep.subr.bf16.mxu0 %v3195_v0 }
 0x65b   :  { %v702_v43 = vpop.f32.mrb[6].mxu1 }
 0x65c   :  { %v2702_v44 = vpop.f32.mrb[7].mxu1 }
 0x65d   :  { %v627_v47 = vpop.f32.mrb[10].mxu0 }
 0x65e   :  { %v703_v48 = vadd.f32 %v702_v43, %v627_v47  ;;  %v2691_v49 = vpop.f32.mrb[11].mxu0 }
 0x660   :  { %v706_v50 = vadd.f32 %v703_v48, %v3399_v1 }
 0x662   :  { %3091 = vtanh.f32 %v706_v50  ;;  %v2456_v63 = vmul.f32 -1.442695, %v706_v50 }
 0x665   :  { %v797_v52 = vpop.f32.mrb[12].mxu0 }
 0x666   :  { %v798_v57 = vadd.f32 %v797_v52, %v166_v51  ;;  %v2713_v59 = vpop.f32.mrb[13].mxu0 }
 0x668   :  { %3093 = vtanh.f32 %v798_v57  ;;  %v2458_v2 = vmul.f32 -1.442695, %v798_v57 }
 0x669   :  { %3095 = vpow2.f32 %v2456_v63 }
 0x66a   :  { %3097 = vpow2.f32 %v2458_v2 }
 0x66c   :  { %v3092_v61 = vpop.eup %3091 }
 0x66d   :  { %716 = vrot.lane.b32.xlu0 %v3092_v61, %s3198_s12 }
 0x672   :  { %v3094_v62 = vpop.eup %3093 }
 0x673   :  { %810 = vrot.lane.b32.xlu1 %v3094_v62, %s3198_s12  ;;  %v3096_v3 = vpop.eup %3095 }
 0x674   :  { %v710_v5 = vadd.f32 1.0, %v3096_v3  ;;  %v3098_v6 = vpop.eup %3097 }
 0x675   :  { %v804_v7 = vadd.f32 1.0, %v3098_v6 }
 0x676   :  { %3099 = vrcp.f32 %v710_v5 }
 0x677   :  { %3101 = vrcp.f32 %v804_v7 }
 0x680   :  { %v3100_v54 = vpop.eup %3099 }
 0x681   :  { %v3102_v13 = vpop.eup %3101  ;;  %v714_v17 = vmul.f32 %v3100_v54, %v3410_v33 }
 0x682   :  { %v808_v19 = vmul.f32 %v3102_v13, %v3407_v29 }
 0x6df   :  { %v717_v9 = vpop.permute.xlu0 %716 }
 0x6e0   :  { %v719_v11 = vmul.f32 %v3100_v54, %v717_v9 }
 0x6e2   :  { %721 = vrot.lane.b32.xlu0 %v719_v11, %s3199_s3 }
 0x6e5   :  { %v811_v12 = vpop.permute.xlu1 %810 }
 0x6e6   :  { %v813_v16 = vmul.f32 %v3102_v13, %v811_v12 }
 0x6e8   :  { %815 = vrot.lane.b32.xlu1 %v813_v16, %s3199_s3 }
 0x754   :  { %v722_v14 = vpop.permute.xlu0 %721 }
 0x755   :  { %v3446_v18 = vadd.f32 %v722_v14, %v714_v17 }
 0x757   :  { %3103 = vtanh.f32 %v3446_v18 }
 0x75a   :  { %v816_v20 = vpop.permute.xlu1 %815 }
 0x75b   :  { %v3450_v21 = vadd.f32 %v816_v20, %v808_v19 }
 0x75d   :  { %3105 = vtanh.f32 %v3450_v21 }
 0x761   :  { %v3104_v22 = vpop.eup %3103 }
 0x762   :  { %727 = vrot.lane.b32.xlu0 %v3104_v22, %s3198_s12 }
 0x767   :  { %v3106_v23 = vpop.eup %3105 }
 0x768   :  { %821 = vrot.lane.b32.xlu1 %v3106_v23, %s3198_s12 }
 0x7d4   :  { %v728_v24 = vpop.permute.xlu0 %727 }
 0x7d5   :  { %v730_v25 = vmul.f32 %v3100_v54, %v728_v24  ;;  %v176_v24 = vadd.f32 %v3375_v56, %v3284_v15 }
 0x7d7   :  { %826 = vrot.lane.b32.xlu0 %v730_v25, %s3199_s3 }
 0x7da   :  { %v822_v26 = vpop.permute.xlu1 %821 }
 0x7db   :  { %v824_v27 = vmul.f32 %v3102_v13, %v822_v26 }
 0x7dd   :  { %901 = vrot.lane.b32.xlu1 %v824_v27, %s3199_s3 }
 0x849   :  { %v827_v28 = vpop.permute.xlu0 %826 }
 0x84a   :  { %2723 = vmatmul.mubr.msk.f32.vlgmr.msra.gmra.mrb[8].mxu1 %vm194_vm3, %v827_v28 }
 0x84b   :  { %2968 = vmatpush3.bf16.msra.mxu1 %v3245_v4  ;;  %2744 = vmatprep.mubr.msk.f32.mxu1 %vm3196_vm2, %v3197_v8 }
 0x84c   :  { %2969 = vmatprep.subr.bf16.mxu1 %v3195_v0 }
 0x84f   :  { %2971 = vmatpush3.bf16.msra.mxu1 %v3266_v10  ;;  %v902_v29 = vpop.permute.xlu1 %901 }
 0x850   :  { %2734 = vmatmul.mubr.msk.f32.vlgmr.msra.gmra.mrb[14].mxu0 %vm194_vm3, %v902_v29  ;;  %2978 = vmatprep.subr.bf16.mxu1 %v3195_v0 }
 0x851   :  { %2974 = vmatpush3.bf16.msra.mxu0 %v3314_v39  ;;  %2755 = vmatprep.mubr.msk.f32.mxu0 %vm3196_vm2, %v3197_v8 }
 0x852   :  { %2745 = vmatmul.mubr.msk.f32.vlgmr.msra.gmra.mrb[10].mxu1 %vm194_vm3, %v902_v29  ;;  %2975 = vmatprep.subr.bf16.mxu0 %v3195_v0 }
 0x853   :  { %2980 = vmatpush3.bf16.msra.mxu1 %v3303_v35  ;;  %2766 = vmatprep.mubr.msk.f32.mxu1 %vm3196_vm2, %v3197_v8 }
 0x854   :  { %2981 = vmatprep.subr.bf16.mxu1 %v3195_v0 }
 0x855   :  { %2977 = vmatpush3.bf16.msra.mxu0 %v3335_v45 }
 0x856   :  { %2984 = vmatprep.subr.bf16.mxu0 %v3195_v0 }
 0x857   :  { %2983 = vmatpush3.bf16.msra.mxu1 %v3337_v46 }
 0x858   :  { %2990 = vmatprep.subr.bf16.mxu1 %v3195_v0 }
 0x91d   :  { %v896_v30 = vpop.f32.mrb[8].mxu1 }
 0x91e   :  { %v2724_v32 = vpop.f32.mrb[9].mxu1 }
 0x923   :  { %v971_v33 = vpop.f32.mrb[14].mxu0 }
 0x924   :  { %v972_v36 = vadd.f32 %v971_v33, %v896_v30  ;;  %v2735_v37 = vpop.f32.mrb[15].mxu0 }
 0x925   :  { %v1066_v38 = vpop.f32.mrb[10].mxu1 }
 0x926   :  { %v975_v31 = vadd.f32 %v972_v36, %v3399_v1  ;;  %v1067_v40 = vadd.f32 %v1066_v38, %v171_v34  ;;  %v2746_v41 = vpop.f32.mrb[11].mxu1 }
 0x928   :  { %3107 = vtanh.f32 %v975_v31  ;;  %v2461_v44 = vmul.f32 -1.442695, %v975_v31  ;;  %v2463_v47 = vmul.f32 -1.442695, %v1067_v40 }
 0x929   :  { %3109 = vtanh.f32 %v1067_v40 }
 0x92a   :  { %3111 = vpow2.f32 %v2461_v44 }
 0x92b   :  { %3113 = vpow2.f32 %v2463_v47 }
 0x932   :  { %v3108_v42 = vpop.eup %3107 }
 0x933   :  { %v3110_v43 = vpop.eup %3109  ;;  %985 = vrot.lane.b32.xlu0 %v3108_v42, %s3198_s12 }
 0x934   :  { %1079 = vrot.lane.b32.xlu1 %v3110_v43, %s3198_s12  ;;  %v3112_v53 = vpop.eup %3111 }
 0x935   :  { %v3114_v48 = vpop.eup %3113  ;;  %v979_v49 = vadd.f32 1.0, %v3112_v53 }
 0x936   :  { %v1073_v50 = vadd.f32 1.0, %v3114_v48 }
 0x937   :  { %3115 = vrcp.f32 %v979_v49 }
 0x938   :  { %3117 = vrcp.f32 %v1073_v50 }
 0x941   :  { %v3116_v51 = vpop.eup %3115 }
 0x942   :  { %v3118_v57 = vpop.eup %3117  ;;  %v983_v63 = vmul.f32 %v3116_v51, %v3446_v18 }
 0x943   :  { %v1077_v2 = vmul.f32 %v3118_v57, %v3450_v21 }
 0x9a5   :  { %v986_v52 = vpop.permute.xlu0 %985 }
 0x9a6   :  { %v1080_v59 = vpop.permute.xlu1 %1079  ;;  %v988_v61 = vmul.f32 %v3116_v51, %v986_v52 }
 0x9a7   :  { %v1082_v62 = vmul.f32 %v3118_v57, %v1080_v59 }
 0x9a8   :  { %990 = vrot.lane.b32.xlu0 %v988_v61, %s3199_s3 }
 0x9a9   :  { %1084 = vrot.lane.b32.xlu1 %v1082_v62, %s3199_s3 }
 0xa1a   :  { %v991_v3 = vpop.permute.xlu0 %990 }
 0xa1b   :  { %v1085_v5 = vpop.permute.xlu1 %1084  ;;  %v3487_v6 = vadd.f32 %v991_v3, %v983_v63 }
 0xa1c   :  { %v3489_v7 = vadd.f32 %v1085_v5, %v1077_v2 }
 0xa1d   :  { %3119 = vtanh.f32 %v3487_v6 }
 0xa1e   :  { %3121 = vtanh.f32 %v3489_v7 }
 0xa27   :  { %v3120_v54 = vpop.eup %3119 }
 0xa28   :  { %v3122_v9 = vpop.eup %3121  ;;  %996 = vrot.lane.b32.xlu0 %v3120_v54, %s3198_s12  ;;  %v181_v54 = vadd.f32 %v3373_v55, %v3284_v15 }
 0xa29   :  { %1090 = vrot.lane.b32.xlu1 %v3122_v9, %s3198_s12 }
 0xa9a   :  { %v997_v11 = vpop.permute.xlu0 %996 }
 0xa9b   :  { %v1091_v13 = vpop.permute.xlu1 %1090  ;;  %v999_v12 = vmul.f32 %v3116_v51, %v997_v11 }
 0xa9c   :  { %v1093_v16 = vmul.f32 %v3118_v57, %v1091_v13 }
 0xa9d   :  { %1095 = vrot.lane.b32.xlu0 %v999_v12, %s3199_s3 }
 0xa9e   :  { %1170 = vrot.lane.b32.xlu1 %v1093_v16, %s3199_s3 }
 0xb0f   :  { %v1096_v17 = vpop.permute.xlu0 %1095 }
 0xb10   :  { %v1171_v14 = vpop.permute.xlu1 %1170  ;;  %2756 = vmatmul.mubr.msk.f32.vlgmr.msra.gmra.mrb[16].mxu0 %vm194_vm3, %v1096_v17 }
 0xb11   :  { %2767 = vmatmul.mubr.msk.f32.vlgmr.msra.gmra.mrb[12].mxu1 %vm194_vm3, %v1171_v14  ;;  %2986 = vmatpush3.bf16.msra.mxu0 %v3245_v4 }
 0xb12   :  { %2987 = vmatprep.subr.bf16.mxu0 %v3195_v0  ;;  %2777 = vmatprep.mubr.msk.f32.mxu0 %vm3196_vm2, %v3197_v8 }
 0xb13   :  { %2992 = vmatpush3.bf16.msra.mxu1 %v3314_v39  ;;  %2788 = vmatprep.mubr.msk.f32.mxu1 %vm3196_vm2, %v3197_v8 }
 0xb14   :  { %2993 = vmatprep.subr.bf16.mxu1 %v3195_v0 }
 0xb15   :  { %2989 = vmatpush3.bf16.msra.mxu0 %v3266_v10 }
 0xb16   :  { %2996 = vmatprep.subr.bf16.mxu0 %v3195_v0 }
 0xb17   :  { %2995 = vmatpush3.bf16.msra.mxu1 %v3335_v45 }
 0xb18   :  { %2778 = vmatmul.mubr.msk.f32.vlgmr.msra.gmra.mrb[18].mxu0 %vm194_vm3, %v1171_v14  ;;  %3002 = vmatprep.subr.bf16.mxu1 %v3195_v0 }
 0xb19   :  { %2998 = vmatpush3.bf16.msra.mxu0 %v3303_v35  ;;  %2799 = vmatprep.mubr.msk.f32.mxu0 %vm3196_vm2, %v3197_v8 }
 0xb1a   :  { %2999 = vmatprep.subr.bf16.mxu0 %v3195_v0 }
 0xb1d   :  { %3001 = vmatpush3.bf16.msra.mxu0 %v3337_v46 }
 0xb1e   :  { %3008 = vmatprep.subr.bf16.mxu0 %v3195_v0 }
 0xbe3   :  { %v1165_v18 = vpop.f32.mrb[16].mxu0 }
 0xbe4   :  { %v1240_v19 = vpop.f32.mrb[12].mxu1  ;;  %v2757_v20 = vpop.f32.mrb[17].mxu0 }
 0xbe5   :  { %v1241_v21 = vadd.f32 %v1240_v19, %v1165_v18  ;;  %v2768_v22 = vpop.f32.mrb[13].mxu1 }
 0xbe7   :  { %v1244_v23 = vadd.f32 %v1241_v21, %v3399_v1 }
 0xbe9   :  { %3123 = vtanh.f32 %v1244_v23  ;;  %v2466_v30 = vmul.f32 -1.442695, %v1244_v23 }
 0xbeb   :  { %v1335_v25 = vpop.f32.mrb[18].mxu0 }
 0xbec   :  { %v1336_v26 = vadd.f32 %v1335_v25, %v176_v24  ;;  %v2779_v27 = vpop.f32.mrb[19].mxu0 }
 0xbee   :  { %3125 = vtanh.f32 %v1336_v26  ;;  %v2468_v32 = vmul.f32 -1.442695, %v1336_v26 }
 0xbef   :  { %3127 = vpow2.f32 %v2466_v30 }
 0xbf0   :  { %3129 = vpow2.f32 %v2468_v32 }
 0xbf3   :  { %v3124_v28 = vpop.eup %3123 }
 0xbf4   :  { %1254 = vrot.lane.b32.xlu0 %v3124_v28, %s3198_s12 }
 0xbf8   :  { %v3126_v29 = vpop.eup %3125 }
 0xbf9   :  { %1348 = vrot.lane.b32.xlu1 %v3126_v29, %s3198_s12  ;;  %v3128_v33 = vpop.eup %3127 }
 0xbfa   :  { %v1248_v34 = vadd.f32 1.0, %v3128_v33  ;;  %v3130_v36 = vpop.eup %3129 }
 0xbfb   :  { %v1342_v37 = vadd.f32 1.0, %v3130_v36 }
 0xbfc   :  { %3131 = vrcp.f32 %v1248_v34 }
 0xbfd   :  { %3133 = vrcp.f32 %v1342_v37 }
 0xc06   :  { %v3132_v56 = vpop.eup %3131 }
 0xc07   :  { %v3134_v40 = vpop.eup %3133  ;;  %v1252_v43 = vmul.f32 %v3132_v56, %v3487_v6 }
 0xc08   :  { %v1346_v53 = vmul.f32 %v3134_v40, %v3489_v7 }
 0xc66   :  { %v1255_v38 = vpop.permute.xlu0 %1254 }
 0xc67   :  { %v1257_v31 = vmul.f32 %v3132_v56, %v1255_v38 }
 0xc69   :  { %1259 = vrot.lane.b32.xlu0 %v1257_v31, %s3199_s3 }
 0xc6b   :  { %v1349_v41 = vpop.permute.xlu1 %1348 }
 0xc6c   :  { %v1351_v42 = vmul.f32 %v3134_v40, %v1349_v41 }
 0xc6e   :  { %1353 = vrot.lane.b32.xlu1 %v1351_v42, %s3199_s3 }
 0xcdb   :  { %v1260_v44 = vpop.permute.xlu0 %1259 }
 0xcdc   :  { %v3526_v47 = vadd.f32 %v1260_v44, %v1252_v43 }
 0xcde   :  { %3135 = vtanh.f32 %v3526_v47 }
 0xce0   :  { %v1354_v48 = vpop.permute.xlu1 %1353 }
 0xce1   :  { %v3530_v49 = vadd.f32 %v1354_v48, %v1346_v53 }
 0xce3   :  { %3137 = vtanh.f32 %v3530_v49 }
 0xce8   :  { %v3136_v50 = vpop.eup %3135 }
 0xce9   :  { %1265 = vrot.lane.b32.xlu0 %v3136_v50, %s3198_s12  ;;  %v186_v50 = vadd.f32 %v3379_v60, %v3284_v15 }
 0xced   :  { %v3138_v51 = vpop.eup %3137 }
 0xcee   :  { %1359 = vrot.lane.b32.xlu1 %v3138_v51, %s3198_s12 }
 0xd5b   :  { %v1266_v52 = vpop.permute.xlu0 %1265 }
 0xd5c   :  { %v1268_v57 = vmul.f32 %v3132_v56, %v1266_v52 }
 0xd5e   :  { %1364 = vrot.lane.b32.xlu0 %v1268_v57, %s3199_s3 }
 0xd60   :  { %v1360_v59 = vpop.permute.xlu1 %1359 }
 0xd61   :  { %v1362_v61 = vmul.f32 %v3134_v40, %v1360_v59 }
 0xd63   :  { %1439 = vrot.lane.b32.xlu1 %v1362_v61, %s3199_s3 }
 0xdd0   :  { %v1365_v62 = vpop.permute.xlu0 %1364 }
 0xdd1   :  { %2789 = vmatmul.mubr.msk.f32.vlgmr.msra.gmra.mrb[14].mxu1 %vm194_vm3, %v1365_v62 }
 0xdd2   :  { %3004 = vmatpush3.bf16.msra.mxu1 %v3245_v4  ;;  %2810 = vmatprep.mubr.msk.f32.mxu1 %vm3196_vm2, %v3197_v8 }
 0xdd3   :  { %3005 = vmatprep.subr.bf16.mxu1 %v3195_v0 }
 0xdd5   :  { %v1440_v63 = vpop.permute.xlu1 %1439 }
 0xdd6   :  { %3007 = vmatpush3.bf16.msra.mxu1 %v3266_v10  ;;  %2800 = vmatmul.mubr.msk.f32.vlgmr.msra.gmra.mrb[20].mxu0 %vm194_vm3, %v1440_v63 }
 0xdd7   :  { %3010 = vmatpush3.bf16.msra.mxu0 %v3314_v39  ;;  %3014 = vmatprep.subr.bf16.mxu1 %v3195_v0 }
 0xdd8   :  { %3011 = vmatprep.subr.bf16.mxu0 %v3195_v0  ;;  %2821 = vmatprep.mubr.msk.f32.mxu0 %vm3196_vm2, %v3197_v8 }
 0xdd9   :  { %2811 = vmatmul.mubr.msk.f32.vlgmr.msra.gmra.mrb[16].mxu1 %vm194_vm3, %v1440_v63 }
 0xdda   :  { %3016 = vmatpush3.bf16.msra.mxu1 %v3303_v35  ;;  %2832 = vmatprep.mubr.msk.f32.mxu1 %vm3196_vm2, %v3197_v8 }
 0xddb   :  { %3013 = vmatpush3.bf16.msra.mxu0 %v3335_v45  ;;  %3017 = vmatprep.subr.bf16.mxu1 %v3195_v0 }
 0xddc   :  { %3020 = vmatprep.subr.bf16.mxu0 %v3195_v0 }
 0xdde   :  { %3019 = vmatpush3.bf16.msra.mxu1 %v3337_v46 }
 0xddf   :  { %3026 = vmatprep.subr.bf16.mxu1 %v3195_v0 }
 0xea4   :  { %v1434_v2 = vpop.f32.mrb[14].mxu1 }
 0xea5   :  { %v2790_v3 = vpop.f32.mrb[15].mxu1 }
 0xea9   :  { %v1509_v5 = vpop.f32.mrb[20].mxu0 }
 0xeaa   :  { %v1510_v6 = vadd.f32 %v1509_v5, %v1434_v2  ;;  %v2801_v7 = vpop.f32.mrb[21].mxu0 }
 0xeac   :  { %v1513_v9 = vadd.f32 %v1510_v6, %v3399_v1  ;;  %v1604_v11 = vpop.f32.mrb[16].mxu1 }
 0xead   :  { %v1605_v13 = vadd.f32 %v1604_v11, %v181_v54  ;;  %v2812_v12 = vpop.f32.mrb[17].mxu1 }
 0xeae   :  { %3139 = vtanh.f32 %v1513_v9  ;;  %v2471_v14 = vmul.f32 -1.442695, %v1513_v9 }
 0xeaf   :  { %3141 = vtanh.f32 %v1605_v13  ;;  %v2473_v18 = vmul.f32 -1.442695, %v1605_v13 }
 0xeb0   :  { %3143 = vpow2.f32 %v2471_v14 }
 0xeb1   :  { %3145 = vpow2.f32 %v2473_v18 }
 0xeb8   :  { %v3140_v16 = vpop.eup %3139 }
 0xeb9   :  { %v3142_v17 = vpop.eup %3141  ;;  %1523 = vrot.lane.b32.xlu0 %v3140_v16, %s3198_s12 }
 0xeba   :  { %1617 = vrot.lane.b32.xlu1 %v3142_v17, %s3198_s12  ;;  %v3144_v19 = vpop.eup %3143 }
 0xebb   :  { %v3146_v20 = vpop.eup %3145  ;;  %v1517_v55 = vadd.f32 1.0, %v3144_v19 }
 0xebc   :  { %v1611_v21 = vadd.f32 1.0, %v3146_v20 }
 0xebd   :  { %3147 = vrcp.f32 %v1517_v55 }
 0xebe   :  { %3149 = vrcp.f32 %v1611_v21 }
 0xec7   :  { %v3148_v22 = vpop.eup %3147 }
 0xec8   :  { %v3150_v24 = vpop.eup %3149  ;;  %v1521_v28 = vmul.f32 %v3148_v22, %v3526_v47 }
 0xec9   :  { %v1615_v29 = vmul.f32 %v3150_v24, %v3530_v49 }
 0xf2b   :  { %v1524_v23 = vpop.permute.xlu0 %1523 }
 0xf2c   :  { %v1618_v25 = vpop.permute.xlu1 %1617  ;;  %v1526_v26 = vmul.f32 %v3148_v22, %v1524_v23 }
 0xf2d   :  { %v1620_v27 = vmul.f32 %v3150_v24, %v1618_v25 }
 0xf2e   :  { %1528 = vrot.lane.b32.xlu0 %v1526_v26, %s3199_s3 }
 0xf2f   :  { %1622 = vrot.lane.b32.xlu1 %v1620_v27, %s3199_s3 }
 0xfa0   :  { %v1529_v30 = vpop.permute.xlu0 %1528 }
 0xfa1   :  { %v1623_v32 = vpop.permute.xlu1 %1622  ;;  %v3567_v33 = vadd.f32 %v1529_v30, %v1521_v28 }
 0xfa2   :  { %v3569_v34 = vadd.f32 %v1623_v32, %v1615_v29  ;;  %v191_v29 = vadd.f32 %v3377_v58, %v3284_v15 }
 0xfa3   :  { %3151 = vtanh.f32 %v3567_v33 }
 0xfa4   :  { %3153 = vtanh.f32 %v3569_v34 }
 0xfad   :  { %v3152_v36 = vpop.eup %3151 }
 0xfae   :  { %v3154_v37 = vpop.eup %3153  ;;  %1534 = vrot.lane.b32.xlu0 %v3152_v36, %s3198_s12 }
 0xfaf   :  { %1628 = vrot.lane.b32.xlu1 %v3154_v37, %s3198_s12 }
0x1020   :  { %v1535_v56 = vpop.permute.xlu0 %1534 }
0x1021   :  { %v1629_v38 = vpop.permute.xlu1 %1628  ;;  %v1537_v31 = vmul.f32 %v3148_v22, %v1535_v56 }
0x1022   :  { %v1631_v40 = vmul.f32 %v3150_v24, %v1629_v38 }
0x1023   :  { %1633 = vrot.lane.b32.xlu0 %v1537_v31, %s3199_s3 }
0x1024   :  { %1708 = vrot.lane.b32.xlu1 %v1631_v40, %s3199_s3 }
0x1095   :  { %v1634_v41 = vpop.permute.xlu0 %1633 }
0x1096   :  { %v1709_v42 = vpop.permute.xlu1 %1708  ;;  %2822 = vmatmul.mubr.msk.f32.vlgmr.msra.gmra.mrb[22].mxu0 %vm194_vm3, %v1634_v41 }
0x1097   :  { %2833 = vmatmul.mubr.msk.f32.vlgmr.msra.gmra.mrb[18].mxu1 %vm194_vm3, %v1709_v42  ;;  %3022 = vmatpush3.bf16.msra.mxu0 %v3245_v4 }
0x1098   :  { %3023 = vmatprep.subr.bf16.mxu0 %v3195_v0  ;;  %2843 = vmatprep.mubr.msk.f32.mxu0 %vm3196_vm2, %v3197_v8 }
0x1099   :  { %3028 = vmatpush3.bf16.msra.mxu1 %v3314_v39  ;;  %2854 = vmatprep.mubr.msk.f32.mxu1 %vm3196_vm2, %v3197_v8 }
0x109a   :  { %3029 = vmatprep.subr.bf16.mxu1 %v3195_v0 }
0x109b   :  { %3025 = vmatpush3.bf16.msra.mxu0 %v3266_v10 }
0x109c   :  { %3032 = vmatprep.subr.bf16.mxu0 %v3195_v0 }
0x109d   :  { %3031 = vmatpush3.bf16.msra.mxu1 %v3335_v45 }
0x109e   :  { %2844 = vmatmul.mubr.msk.f32.vlgmr.msra.gmra.mrb[24].mxu0 %vm194_vm3, %v1709_v42  ;;  %3038 = vmatprep.subr.bf16.mxu1 %v3195_v0 }
0x109f   :  { %3034 = vmatpush3.bf16.msra.mxu0 %v3303_v35  ;;  %2865 = vmatprep.mubr.msk.f32.mxu0 %vm3196_vm2, %v3197_v8 }
0x10a0   :  { %3035 = vmatprep.subr.bf16.mxu0 %v3195_v0 }
0x10a3   :  { %3037 = vmatpush3.bf16.msra.mxu0 %v3337_v46 }
0x10a4   :  { %3044 = vmatprep.subr.bf16.mxu0 %v3195_v0 }
0x1169   :  { %v1703_v43 = vpop.f32.mrb[22].mxu0 }
0x116a   :  { %v1778_v44 = vpop.f32.mrb[18].mxu1  ;;  %v2823_v47 = vpop.f32.mrb[23].mxu0 }
0x116b   :  { %v1779_v53 = vadd.f32 %v1778_v44, %v1703_v43  ;;  %v2834_v48 = vpop.f32.mrb[19].mxu1 }
0x116d   :  { %v1782_v49 = vadd.f32 %v1779_v53, %v3399_v1 }
0x116f   :  { %3155 = vtanh.f32 %v1782_v49  ;;  %v2476_v62 = vmul.f32 -1.442695, %v1782_v49 }
0x1171   :  { %v1873_v51 = vpop.f32.mrb[24].mxu0 }
0x1172   :  { %v1874_v52 = vadd.f32 %v1873_v51, %v186_v50  ;;  %v2845_v57 = vpop.f32.mrb[25].mxu0 }
0x1174   :  { %3157 = vtanh.f32 %v1874_v52  ;;  %v2478_v63 = vmul.f32 -1.442695, %v1874_v52 }
0x1175   :  { %3159 = vpow2.f32 %v2476_v62 }
0x1176   :  { %3161 = vpow2.f32 %v2478_v63 }
0x1179   :  { %v3156_v59 = vpop.eup %3155 }
0x117a   :  { %1792 = vrot.lane.b32.xlu0 %v3156_v59, %s3198_s12 }
0x117e   :  { %v3158_v61 = vpop.eup %3157 }
0x117f   :  { %1886 = vrot.lane.b32.xlu1 %v3158_v61, %s3198_s12  ;;  %v3160_v2 = vpop.eup %3159 }
0x1180   :  { %v1786_v3 = vadd.f32 1.0, %v3160_v2  ;;  %v3162_v5 = vpop.eup %3161 }
0x1181   :  { %v1880_v6 = vadd.f32 1.0, %v3162_v5 }
0x1182   :  { %3163 = vrcp.f32 %v1786_v3 }
0x1183   :  { %3165 = vrcp.f32 %v1880_v6 }
0x118c   :  { %v3164_v60 = vpop.eup %3163 }
0x118d   :  { %v3166_v9 = vpop.eup %3165  ;;  %v1790_v12 = vmul.f32 %v3164_v60, %v3567_v33 }
0x118e   :  { %v1884_v14 = vmul.f32 %v3166_v9, %v3569_v34 }
0x11ec   :  { %v1793_v7 = vpop.permute.xlu0 %1792 }
0x11ed   :  { %v1795_v54 = vmul.f32 %v3164_v60, %v1793_v7 }
0x11ef   :  { %1797 = vrot.lane.b32.xlu0 %v1795_v54, %s3199_s3 }
0x11f1   :  { %v1887_v11 = vpop.permute.xlu1 %1886 }
0x11f2   :  { %v1889_v13 = vmul.f32 %v3166_v9, %v1887_v11 }
0x11f4   :  { %1891 = vrot.lane.b32.xlu1 %v1889_v13, %s3199_s3 }
0x1261   :  { %v1798_v16 = vpop.permute.xlu0 %1797 }
0x1262   :  { %v3606_v17 = vadd.f32 %v1798_v16, %v1790_v12 }
0x1264   :  { %3167 = vtanh.f32 %v3606_v17 }
0x1266   :  { %v1892_v18 = vpop.permute.xlu1 %1891 }
0x1267   :  { %v3610_v19 = vadd.f32 %v1892_v18, %v1884_v14 }
0x1269   :  { %3169 = vtanh.f32 %v3610_v19 }
0x126e   :  { %v3168_v20 = vpop.eup %3167 }
0x126f   :  { %1803 = vrot.lane.b32.xlu0 %v3168_v20, %s3198_s12  ;;  %v43_v20 = vld [vmem:[%s3683_s4 + $0x8] sm:$0xff] }
0x1273   :  { %v3170_v55 = vpop.eup %3169 }
0x1274   :  { %1897 = vrot.lane.b32.xlu1 %v3170_v55, %s3198_s12  ;;  %v44_v55 = vld [vmem:[%s3683_s4 + $0x10] sm:$0xff] }
0x12e1   :  { %v1804_v21 = vpop.permute.xlu0 %1803 }
0x12e2   :  { %v1806_v22 = vmul.f32 %v3164_v60, %v1804_v21 }
0x12e4   :  { %1902 = vrot.lane.b32.xlu0 %v1806_v22, %s3199_s3  ;;  %v45_v22 = vld [vmem:[%s3683_s4 + $0x18] sm:$0xff] }
0x12e6   :  { %v1898_v23 = vpop.permute.xlu1 %1897 }
0x12e7   :  { %v1900_v24 = vmul.f32 %v3166_v9, %v1898_v23  ;;  %v3060_v23 = vpack.c.bf16 %v45_v22, %v44_v55 }
0x12e9   :  { %1977 = vrot.lane.b32.xlu1 %v1900_v24, %s3199_s3 }
0x1356   :  { %v1903_v25 = vpop.permute.xlu0 %1902 }
0x1357   :  { %2855 = vmatmul.mubr.msk.f32.vlgmr.msra.gmra.mrb[20].mxu1 %vm194_vm3, %v1903_v25 }
0x1358   :  { %3040 = vmatpush3.bf16.msra.mxu1 %v3245_v4  ;;  %2876 = vmatprep.mubr.msk.f32.mxu1 %vm3196_vm2, %v3197_v8 }
0x1359   :  { %3041 = vmatprep.subr.bf16.mxu1 %v3195_v0 }
0x135b   :  { %v1978_v26 = vpop.permute.xlu1 %1977 }
0x135c   :  { %3043 = vmatpush3.bf16.msra.mxu1 %v3266_v10  ;;  %2866 = vmatmul.mubr.msk.f32.vlgmr.msra.gmra.mrb[26].mxu0 %vm194_vm3, %v1978_v26 }
0x135d   :  { %3050 = vmatprep.subr.bf16.mxu1 %v3195_v0  ;;  %3046 = vmatpush3.bf16.msra.mxu0 %v3314_v39 }
0x135e   :  { %3047 = vmatprep.subr.bf16.mxu0 %v3195_v0  ;;  %2887 = vmatprep.mubr.msk.f32.mxu0 %vm3196_vm2, %v3197_v8 }
0x135f   :  { %2877 = vmatmul.mubr.msk.f32.vlgmr.msra.gmra.mrb[22].mxu1 %vm194_vm3, %v1978_v26 }
0x1360   :  { %3052 = vmatpush3.bf16.msra.mxu1 %v3303_v35  ;;  %2898 = vmatprep.mubr.msk.f32.mxu1 %vm3196_vm2, %v3197_v8 }
0x1361   :  { %3053 = vmatprep.subr.bf16.mxu1 %v3195_v0  ;;  %3049 = vmatpush3.bf16.msra.mxu0 %v3335_v45 }
0x1362   :  { %3056 = vmatprep.subr.bf16.mxu0 %v3195_v0 }
0x1364   :  { %3055 = vmatpush3.bf16.msra.mxu1 %v3337_v46 }
0x142a   :  { %v1972_v4 = vpop.f32.mrb[20].mxu1 }
0x142b   :  { %v2856_v10 = vpop.f32.mrb[21].mxu1 }
0x142c   :  { %v2487_v10 = vld [vmem:[%s3684_s5] ss:$0 sm:$0xff] }
0x142f   :  { %v2047_v39 = vpop.f32.mrb[26].mxu0 }
0x1430   :  { %v2048_v27 = vadd.f32 %v2047_v39, %v1972_v4  ;;  %v2867_v28 = vpop.f32.mrb[27].mxu0 }
0x1432   :  { %v2051_v35 = vadd.f32 %v2048_v27, %v3399_v1  ;;  %v2142_v30 = vpop.f32.mrb[22].mxu1 }
0x1433   :  { %v2143_v32 = vadd.f32 %v2142_v30, %v191_v29  ;;  %v2878_v33 = vpop.f32.mrb[23].mxu1 }
0x1434   :  { %3171 = vtanh.f32 %v2051_v35  ;;  %v2481_v46 = vmul.f32 -1.442695, %v2051_v35 }
0x1435   :  { %3173 = vtanh.f32 %v2143_v32  ;;  %v2483_v36 = vmul.f32 -1.442695, %v2143_v32 }
0x1436   :  { %3175 = vpow2.f32 %v2481_v46 }
0x1437   :  { %3177 = vpow2.f32 %v2483_v36 }
0x143e   :  { %v3172_v45 = vpop.eup %3171 }
0x143f   :  { %v3174_v34 = vpop.eup %3173  ;;  %2061 = vrot.lane.b32.xlu0 %v3172_v45, %s3198_s12 }
0x1440   :  { %2155 = vrot.lane.b32.xlu1 %v3174_v34, %s3198_s12  ;;  %v3176_v37 = vpop.eup %3175 }
0x1441   :  { %v3178_v56 = vpop.eup %3177  ;;  %v2055_v15 = vadd.f32 1.0, %v3176_v37 }
0x1442   :  { %v2149_v58 = vadd.f32 1.0, %v3178_v56 }
0x1443   :  { %3179 = vrcp.f32 %v2055_v15 }
0x1444   :  { %3181 = vrcp.f32 %v2149_v58 }
0x144d   :  { %v3180_v38 = vpop.eup %3179 }
0x144e   :  { %v3182_v40 = vpop.eup %3181  ;;  %v2059_v44 = vmul.f32 %v3180_v38, %v3606_v17 }
0x144f   :  { %v2153_v47 = vmul.f32 %v3182_v40, %v3610_v19 }
0x14b1   :  { %v2062_v31 = vpop.permute.xlu0 %2061 }
0x14b2   :  { %v2156_v41 = vpop.permute.xlu1 %2155  ;;  %v2064_v42 = vmul.f32 %v3180_v38, %v2062_v31 }
0x14b3   :  { %v2158_v43 = vmul.f32 %v3182_v40, %v2156_v41 }
0x14b4   :  { %2066 = vrot.lane.b32.xlu0 %v2064_v42, %s3199_s3 }
0x14b5   :  { %2160 = vrot.lane.b32.xlu1 %v2158_v43, %s3199_s3 }
0x1526   :  { %v2067_v53 = vpop.permute.xlu0 %2066 }
0x1527   :  { %v2161_v48 = vpop.permute.xlu1 %2160  ;;  %v2069_v49 = vadd.f32 %v2067_v53, %v2059_v44 }
0x1528   :  { %v2163_v50 = vadd.f32 %v2161_v48, %v2153_v47 }
0x1529   :  { %3183 = vtanh.f32 %v2069_v49 }
0x152a   :  { %3185 = vtanh.f32 %v2163_v50 }
0x1533   :  { %v3184_v51 = vpop.eup %3183 }
0x1534   :  { %v3186_v52 = vpop.eup %3185  ;;  %2072 = vrot.lane.b32.xlu0 %v3184_v51, %s3198_s12 }
0x1535   :  { %2166 = vrot.lane.b32.xlu1 %v3186_v52, %s3198_s12 }
0x15a6   :  { %v2073_v57 = vpop.permute.xlu0 %2072 }
0x15a7   :  { %v2167_v59 = vpop.permute.xlu1 %2166  ;;  %v2075_v61 = vmul.f32 %v3180_v38, %v2073_v57 }
0x15a8   :  { %v2169_v62 = vmul.f32 %v3182_v40, %v2167_v59 }
0x15a9   :  { %2171 = vrot.lane.b32.xlu0 %v2075_v61, %s3199_s3 }
0x15aa   :  { %2246 = vrot.lane.b32.xlu1 %v2169_v62, %s3199_s3 }
0x161b   :  { %v2172_v63 = vpop.permute.xlu0 %2171 }
0x161c   :  { %v2247_v2 = vpop.permute.xlu1 %2246  ;;  %2888 = vmatmul.mubr.msk.f32.vlgmr.msra.gmra.mrb[28].mxu0 %vm194_vm3, %v2172_v63 }
0x161d   :  { %2899 = vmatmul.mubr.msk.f32.vlgmr.msra.gmra.mrb[24].mxu1 %vm194_vm3, %v2247_v2  ;;  %2909 = vmatprep.mubr.msk.f32.mxu0 %vm3196_vm2, %v3197_v8 }
0x16ef   :  { %v2241_v3 = vpop.f32.mrb[28].mxu0 }
0x16f0   :  { %v2316_v5 = vpop.f32.mrb[24].mxu1  ;;  %v2889_v6 = vpop.f32.mrb[29].mxu0 }
0x16f1   :  { %v2317_v60 = vadd.f32 %v2316_v5, %v2241_v3  ;;  %v2900_v7 = vpop.f32.mrb[25].mxu1 }
0x16f3   :  { %v2320_v54 = vadd.f32 %v2317_v60, %v3399_v1  ;;  %v42_v1 = vld [vmem:[%s3683_s4] sm:$0xff] }
0x16f4   :  { %v3057_v21 = vpack.c.bf16 %v43_v20, %v42_v1 }
0x16f5   :  { %3187 = vtanh.f32 %v2320_v54  ;;  %v2486_v11 = vmul.f32 -1.442695, %v2320_v54 }
0x16f6   :  { %3058 = vmatpush3.bf16.msra.mxu0 %v3057_v21 }
0x16f7   :  { %3189 = vpow2.f32 %v2486_v11  ;;  %3059 = vmatprep.subr.bf16.mxu0 %v3195_v0 }
0x16fa   :  { %3061 = vmatpush3.bf16.msra.mxu0 %v3060_v23 }
0x16ff   :  { %v3188_v9 = vpop.eup %3187 }
0x1700   :  { %2330 = vrot.lane.b32.xlu0 %v3188_v9, %s3198_s12 }
0x1701   :  { %v3190_v13 = vpop.eup %3189 }
0x1702   :  { %v2324_v12 = vadd.f32 1.0, %v3190_v13 }
0x1704   :  { %3191 = vrcp.f32 %v2324_v12 }
0x170e   :  { %v3192_v16 = vpop.eup %3191 }
0x170f   :  { %v2328_v8 = vmul.f32 %v3192_v16, %v2069_v49 }
0x1772   :  { %v2331_v17 = vpop.permute.xlu0 %2330 }
0x1773   :  { %v2333_v14 = vmul.f32 %v3192_v16, %v2331_v17 }
0x1775   :  { %2335 = vrot.lane.b32.xlu1 %v2333_v14, %s3199_s3 }
0x17e7   :  { %v2336_v18 = vpop.permute.xlu1 %2335 }
0x17e8   :  { %v2338_v19 = vadd.f32 %v2336_v18, %v2328_v8 }
0x17ea   :  { %3193 = vtanh.f32 %v2338_v19 }
0x17f4   :  { %v3194_v24 = vpop.eup %3193 }
0x17f5   :  { %2341 = vrot.lane.b32.xlu0 %v3194_v24, %s3198_s12 }
0x1867   :  { %v2342_v25 = vpop.permute.xlu0 %2341 }
0x1868   :  { %v2344_v26 = vmul.f32 %v3192_v16, %v2342_v25 }
0x186a   :  { %2352 = vrot.lane.b32.xlu1 %v2344_v26, %s3199_s3 }
0x18dc   :  { %v2353_v4 = vpop.permute.xlu1 %2352 }
0x18dd   :  { %2910 = vmatmul.mubr.msk.f32.vlgmr.msra.gmra.mrb[30].mxu0 %vm194_vm3, %v2353_v4 }
0x19b0   :  { %v2422_v39 = vpop.f32.mrb[30].mxu0 }
0x19b1   :  { %v2423_v27 = vadd.f32 %v2487_v10, %v2422_v39  ;;  %v2911_v28 = vpop.f32.mrb[31].mxu0 }
0x19b3   :  { %2427 = vst.msk [vmem:[%s3685_s6] sm:$0xff] %vm2426_vm4, %v2423_v27 }

</bundles_post_ra>
